<compile_context>
chip_gen: v7x
topology: tpu7x:2x2x1
jax: 0.10.0
libtpu: 0.0.40
codegen_flags: <defaults>
</compile_context>

<pallas_src>
import numpy as np
import jax
import jax.numpy as jnp
from jax.experimental import pallas as pl
from jax.experimental.pallas import tpu as pltpu


# ---------------------------------------------------------------------------
# One-time graph setup (plain numpy, mirrors scaled_Laplacian / cheb_polynomial
# in the module's __init__) -- NOT on the forward path.
# ---------------------------------------------------------------------------
def scaled_laplacian(adj: np.ndarray) -> np.ndarray:
    """L_tilde = 2*L / lambda_max - I,   L = D - A."""
    d = np.diag(adj.sum(axis=1))
    lap = d - adj
    lambda_max = np.linalg.eigvalsh(lap).max()
    n = adj.shape[0]
    return (2.0 * lap) / lambda_max - np.identity(n)


def cheb_polynomial(l_tilde: np.ndarray, k: int):
    """T_0 = I, T_1 = L_tilde, T_i = 2*L_tilde*T_{i-1} - T_{i-2}."""
    n = l_tilde.shape[0]
    polys = [np.identity(n, dtype=np.float64), l_tilde.copy()]
    for _ in range(2, k):
        polys.append(2.0 * l_tilde @ polys[-1] - polys[-2])
    return [p.astype(np.float32) for p in polys[:k]]


def build_cheb_basis(adj: np.ndarray, k: int) -> jax.Array:
    """Setup-time constant: stacked, PRE-TRANSPOSED Chebyshev polynomials in
    bf16 (cheb_TT[j] = T_j^T).  Built once, so the forward never pays a K*N^2
    swapaxes/cast pass and streams half the bytes."""
    l_tilde = scaled_laplacian(adj)
    polys = cheb_polynomial(l_tilde, k)
    tt = np.stack([p.T.copy() for p in polys], axis=0)      # (K, N, N)
    return jnp.asarray(tt, dtype=jnp.bfloat16)


# ---------------------------------------------------------------------------
# Pallas kernel: grid = (N // row_tile,) — parallel over graph row tiles.
# ---------------------------------------------------------------------------
def cheb_conv_kernel(xf_ref, tt_ref, thb_ref, o_ref):
    # xf_ref:  (N, B*C_in)          bf16, resident (one DMA for the whole call)
    # tt_ref:  (K, row_tile, N)     bf16 row tile of every pre-transposed T_k
    # thb_ref: (K, B*C_in, B*C_out) f32 block-diagonal Theta, resident
    # o_ref:   (row_tile, B*C_out)  f32
    k_order, row_tile, n = tt_ref.shape
    bc_out = thb_ref.shape[2]

    if row_tile % 8 == 0:
        # All K graph matmuls fused into ONE MXU call:
        #   (K*row_tile, N) @ (N, B*C_in) -> (K*row_tile, B*C_in), f32 acc.
        # Merging the two leading dims is layout-free (lane dim untouched,
        # sublane dim stays a multiple of 8): no relayout, no copy.
        tt_flat = tt_ref[...].reshape(k_order * row_tile, n)
        g = jnp.dot(tt_flat, xf_ref[...], preferred_element_type=jnp.float32)
        # Static sublane-aligned slices of the fused result (free).
        g_tiles = [g[k * row_tile:(k + 1) * row_tile] for k in range(k_order)]
    else:
        # Tiny-graph fallback (row_tile == N not a multiple of 8): K dots.
        xf = xf_ref[...]
        g_tiles = [jnp.dot(tt_ref[k], xf, preferred_element_type=jnp.float32)
                   for k in range(k_order)]

    # Combine with the block-diagonal Theta: one
    # (row_tile, B*C_in) @ (B*C_in, B*C_out) matmul per k — no per-batch lane
    # slicing — accumulated in f32.
    acc = jnp.zeros((row_tile, bc_out), jnp.float32)
    for k in range(k_order):                      # static unroll, K is small
        acc = acc + jnp.dot(g_tiles[k], thb_ref[k],
                            preferred_element_type=jnp.float32)

    o_ref[...] = jnp.maximum(acc, 0.0).astype(o_ref.dtype)   # fused ReLU, one store


# ---------------------------------------------------------------------------
# Generation-aware tiling helpers
# ---------------------------------------------------------------------------
def _min_grid_steps() -> int:
    """2 on chips with 2 TensorCores per device (v7x / v4 / v5p) so the
    "parallel" grid axis can shard across them; 1 on single-TC chips
    (v5e / v6e), where extra grid steps only add per-step pipeline overhead."""
    try:
        kind = jax.devices()[0].device_kind.lower()
    except Exception:
        return 2
    return 2 if any(tag in kind for tag in ("v7", "v4", "v5p")) else 1


def _pick_row_tile(n, k_order, elem_bytes, *, min_steps=1,
                   tt_budget_bytes=24 << 20):
    """Largest row tile that divides N, respects the sublane rule
    (row_tile % 8 == 0 or row_tile == N), yields >= min_steps grid steps, and
    keeps the double-buffered T^T tile under a VMEM budget that is safe on
    every generation (v7x has only 64 MiB physical / ~32 MiB scoped)."""
    def tile_fits(t):
        return 2 * k_order * t * n * elem_bytes <= tt_budget_bytes

    if min_steps <= 1 and tile_fits(n):
        return n                                # single maximal tile (1 TC)
    start = max(8, ((n // max(min_steps, 1)) // 8) * 8)
    for t in range(start, 7, -8):
        if n % t == 0 and tile_fits(t):
            return t
    return n                                    # tiny / awkward N fallback


# ---------------------------------------------------------------------------
# Forward wrapper
# ---------------------------------------------------------------------------
def cheb_conv_forward(x, cheb_TT, theta, *, row_tile=None):
    """
    x:       (B, N, C_in)     float32
    cheb_TT: (K, N, N)        bfloat16, cheb_TT[k] = T_k^T (setup-time constant)
    theta:   (K, C_in, C_out) float32
    returns  (B, N, C_out)    float32  == relu(sum_k T_k^T @ x[b] @ Theta_k)
    """
    B, N, C_in = x.shape
    K, _, C_out = theta.shape

    # Per-call layout prep (tiny, O(B*N*C_in)): batch folded into the lane dim,
    # cast to the bf16 streaming dtype.
    xf = jnp.transpose(x, (1, 0, 2)).reshape(N, B * C_in).astype(cheb_TT.dtype)

    # Block-diagonal Theta (K, B*C_in, B*C_out): replaces the per-batch lane
    # slicing inside the kernel.  Kept f32 (tiny + resident).
    eye_b = jnp.eye(B, dtype=jnp.float32)
    theta_blk = (eye_b[None, :, None, :, None]
                 * theta.astype(jnp.float32)[:, None, :, None, :]
                 ).reshape(K, B * C_in, B * C_out)

    if row_tile is None:
        row_tile = _pick_row_tile(N, K, jnp.dtype(cheb_TT.dtype).itemsize,
                                  min_steps=_min_grid_steps())
    assert N % row_tile == 0
    grid = (N // row_tile,)

    def run(single_buffer_resident):
        def resident(shape):
            zero_map = lambda i, _n=len(shape): (0,) * _n
            if single_buffer_resident:
                # Constant-index blocks don't need double-buffering.
                return pl.BlockSpec(shape, zero_map, pipeline_mode=pl.Buffered(1))
            return pl.BlockSpec(shape, zero_map)

        grid_spec = pltpu.PrefetchScalarGridSpec(
            num_scalar_prefetch=0,
            grid=grid,
            in_specs=[
                resident((N, B * C_in)),                              # Xf: resident
                pl.BlockSpec((K, row_tile, N), lambda i: (0, i, 0)),  # T^T tiles (streamed)
                resident((K, B * C_in, B * C_out)),                   # Theta_blk: resident
            ],
            out_specs=pl.BlockSpec((row_tile, B * C_out), lambda i: (i, 0)),
        )
        return pl.pallas_call(
            cheb_conv_kernel,
            out_shape=jax.ShapeDtypeStruct((N, B * C_out), jnp.float32),
            grid_spec=grid_spec,
            compiler_params=pltpu.CompilerParams(
                dimension_semantics=("parallel",)),
        )(xf, cheb_TT, theta_blk)

    try:
        out2d = run(single_buffer_resident=True)
    except Exception:
        # Some Pallas versions reject pl.Buffered(1) on the top-level pipeline;
        # fall back to default double-buffering of the (tiny) resident blocks.
        out2d = run(single_buffer_resident=False)

    # Lane-folded slab (N, B*C_out) -> (B, N, C_out); pure layout plumbing.
    return out2d.reshape(N, B, C_out).transpose(1, 0, 2)


# ---------------------------------------------------------------------------
# Driver
# ---------------------------------------------------------------------------
if __name__ == "__main__":
    B, N, C_in, C_out, K = 2, 256, 4, 8, 3

    key = jax.random.PRNGKey(0)
    k_adj, k_theta, k_x = jax.random.split(key, 3)

    # Deterministic synthetic adjacency (symmetric, no self loops).
    adj_u = np.asarray(jax.random.uniform(k_adj, (N, N)) > 0.6, dtype=np.float64)
    adj = np.triu(adj_u, 1)
    adj = adj + adj.T

    # Setup-time constants (mirrors the module's __init__): pre-transposed
    # bf16 Chebyshev stack, built once outside the forward path.
    cheb_TT = build_cheb_basis(adj, K)                     # (K, N, N) bf16

    theta = jax.random.normal(k_theta, (K, C_in, C_out), dtype=jnp.float32)
    x = jax.random.normal(k_x, (B, N, C_in), dtype=jnp.float32)

    out = cheb_conv_forward(x, cheb_TT, theta)
    out = jax.block_until_ready(out)
    assert out.shape == (B, N, C_out)

    # Reference (plain JAX, f32 math) on the SAME bf16-quantized T / x the
    # kernel streams; tolerance covers MXU accumulation order and the tiny
    # f32 combine matmul (bf16 streaming makes rtol=1e-4 inapplicable).
    ttf = cheb_TT.astype(jnp.float32)                      # quantized T_k^T
    xq = x.astype(jnp.bfloat16).astype(jnp.float32)        # quantized input
    ref = jnp.zeros((B, N, C_out), dtype=jnp.float32)
    for k in range(K):
        rhs = jnp.einsum("nm,bmc->bnc", ttf[k], xq)        # T_k^T @ x[b]
        ref = ref + jnp.einsum("bnc,co->bno", rhs, theta[k])
    ref = jnp.maximum(ref, 0.0)

    np.testing.assert_allclose(np.asarray(out), np.asarray(ref),
                               rtol=2e-2, atol=2e-2)
    print("KERNEL_OK")
</pallas_src>

<mosaic_0001>
module attributes {stable_mosaic.version = 11 : i64} {
  func.func @cheb_conv_kernel(%arg0: i32, %arg1: memref<256x8xbf16, #tpu.memory_space<vmem>>, %arg2: memref<3x256x256xbf16, #tpu.memory_space<vmem>>, %arg3: memref<3x8x16xf32, #tpu.memory_space<vmem>>, %arg4: memref<256x16xf32, #tpu.memory_space<vmem>>) attributes {dimension_semantics = [#tpu.dimension_semantics<parallel>], iteration_bounds = array<i64: 1>, scalar_prefetch = 0 : i64, scratch_operands = 0 : i64, tpu.core_type = #tpu.core_type<tc>, window_params = [{pipeline_mode = #tpu.pipeline_mode<synchronous>, transform_indices = @transform_0, window_bounds = array<i64: 256, 8>}, {transform_indices = @transform_1, window_bounds = array<i64: 3, 256, 256>}, {pipeline_mode = #tpu.pipeline_mode<synchronous>, transform_indices = @transform_2, window_bounds = array<i64: 3, 8, 16>}, {transform_indices = @transform_3, window_bounds = array<i64: 256, 16>}]} {
    %c0 = arith.constant 0 : index
    %c0_0 = arith.constant 0 : index
    %c0_1 = arith.constant 0 : index
    %0 = vector.load %arg2[%c0, %c0_0, %c0_1] : memref<3x256x256xbf16, #tpu.memory_space<vmem>>, vector<3x256x256xbf16>
    %1 = vector.shape_cast %0 : vector<3x256x256xbf16> to vector<768x256xbf16>
    %c0_2 = arith.constant 0 : index
    %c0_3 = arith.constant 0 : index
    %2 = vector.load %arg1[%c0_2, %c0_3] : memref<256x8xbf16, #tpu.memory_space<vmem>>, vector<256x8xbf16>
    %cst = arith.constant dense<0.000000e+00> : vector<768x8xf32>
    %3 = tpu.matmul %1, %2, %cst {dimension_numbers = #tpu.dot_dimension_numbers<[1], [0], [0], [1], [0, 0, 1, 1], [], []>} : vector<768x256xbf16>, vector<256x8xbf16>, vector<768x8xf32> -> vector<768x8xf32>
    %4 = vector.extract_strided_slice %3 {offsets = [0, 0], sizes = [256, 8], strides = [1, 1]} : vector<768x8xf32> to vector<256x8xf32>
    %5 = vector.extract_strided_slice %3 {offsets = [256, 0], sizes = [256, 8], strides = [1, 1]} : vector<768x8xf32> to vector<256x8xf32>
    %6 = vector.extract_strided_slice %3 {offsets = [512, 0], sizes = [256, 8], strides = [1, 1]} : vector<768x8xf32> to vector<256x8xf32>
    %cst_4 = arith.constant 0.000000e+00 : f32
    %7 = vector.broadcast %cst_4 : f32 to vector<256x16xf32>
    %c0_5 = arith.constant 0 : index
    %c0_6 = arith.constant 0 : index
    %c0_7 = arith.constant 0 : index
    %8 = vector.load %arg3[%c0_5, %c0_6, %c0_7] : memref<3x8x16xf32, #tpu.memory_space<vmem>>, vector<1x8x16xf32>
    %9 = vector.shape_cast %8 : vector<1x8x16xf32> to vector<8x16xf32>
    %cst_8 = arith.constant dense<0.000000e+00> : vector<256x16xf32>
    %10 = tpu.matmul %4, %9, %cst_8 {dimension_numbers = #tpu.dot_dimension_numbers<[1], [0], [0], [1], [0, 0, 1, 1], [], []>} : vector<256x8xf32>, vector<8x16xf32>, vector<256x16xf32> -> vector<256x16xf32>
    %11 = arith.addf %7, %10 : vector<256x16xf32>
    %c1 = arith.constant 1 : index
    %c0_9 = arith.constant 0 : index
    %c0_10 = arith.constant 0 : index
    %12 = vector.load %arg3[%c1, %c0_9, %c0_10] : memref<3x8x16xf32, #tpu.memory_space<vmem>>, vector<1x8x16xf32>
    %13 = vector.shape_cast %12 : vector<1x8x16xf32> to vector<8x16xf32>
    %cst_11 = arith.constant dense<0.000000e+00> : vector<256x16xf32>
    %14 = tpu.matmul %5, %13, %cst_11 {dimension_numbers = #tpu.dot_dimension_numbers<[1], [0], [0], [1], [0, 0, 1, 1], [], []>} : vector<256x8xf32>, vector<8x16xf32>, vector<256x16xf32> -> vector<256x16xf32>
    %15 = arith.addf %11, %14 : vector<256x16xf32>
    %c2 = arith.constant 2 : index
    %c0_12 = arith.constant 0 : index
    %c0_13 = arith.constant 0 : index
    %16 = vector.load %arg3[%c2, %c0_12, %c0_13] : memref<3x8x16xf32, #tpu.memory_space<vmem>>, vector<1x8x16xf32>
    %17 = vector.shape_cast %16 : vector<1x8x16xf32> to vector<8x16xf32>
    %cst_14 = arith.constant dense<0.000000e+00> : vector<256x16xf32>
    %18 = tpu.matmul %6, %17, %cst_14 {dimension_numbers = #tpu.dot_dimension_numbers<[1], [0], [0], [1], [0, 0, 1, 1], [], []>} : vector<256x8xf32>, vector<8x16xf32>, vector<256x16xf32> -> vector<256x16xf32>
    %19 = arith.addf %15, %18 : vector<256x16xf32>
    %cst_15 = arith.constant 0.000000e+00 : f32
    %20 = vector.broadcast %cst_15 : f32 to vector<256x16xf32>
    %21 = arith.maximumf %19, %20 : vector<256x16xf32>
    %c0_16 = arith.constant 0 : index
    %c0_17 = arith.constant 0 : index
    %22 = vector.load %arg4[%c0_16, %c0_17] : memref<256x16xf32, #tpu.memory_space<vmem>>, vector<256x16xf32>
    tpu.vector_store %arg4[%c0_16, %c0_17], %21 {strides = array<i32>} : memref<256x16xf32, #tpu.memory_space<vmem>>, vector<256x16xf32>,
    return
  }
  func.func @transform_0(%arg0: i32) -> (i32, i32) {
    %c0_i32 = arith.constant 0 : i32
    %c0_i32_0 = arith.constant 0 : i32
    %c0_i32_1 = arith.constant 0 : i32
    return %c0_i32, %c0_i32_0 : i32, i32
  }
  func.func @transform_1(%arg0: i32) -> (i32, i32, i32) {
    %c0_i32 = arith.constant 0 : i32
    %c0_i32_0 = arith.constant 0 : i32
    %c0_i32_1 = arith.constant 0 : i32
    return %c0_i32, %arg0, %c0_i32_0 : i32, i32, i32
  }
  func.func @transform_2(%arg0: i32) -> (i32, i32, i32) {
    %c0_i32 = arith.constant 0 : i32
    %c0_i32_0 = arith.constant 0 : i32
    %c0_i32_1 = arith.constant 0 : i32
    %c0_i32_2 = arith.constant 0 : i32
    return %c0_i32, %c0_i32_0, %c0_i32_1 : i32, i32, i32
  }
  func.func @transform_3(%arg0: i32) -> (i32, i32) {
    %c0_i32 = arith.constant 0 : i32
    %c0_i32_0 = arith.constant 0 : i32
    return %arg0, %c0_i32 : i32, i32
  }
}

module attributes {stable_mosaic.version = 11 : i64} {
  func.func @cheb_conv_kernel(%arg0: i32, %arg1: memref<256x8xbf16, #tpu.memory_space<vmem>>, %arg2: memref<3x256x256xbf16, #tpu.memory_space<vmem>>, %arg3: memref<3x8x16xf32, #tpu.memory_space<vmem>>, %arg4: memref<256x16xf32, #tpu.memory_space<vmem>>) attributes {dimension_semantics = [#tpu.dimension_semantics<parallel>], iteration_bounds = array<i64: 1>, scalar_prefetch = 0 : i64, scratch_operands = 0 : i64, tpu.core_type = #tpu.core_type<tc>, window_params = [{pipeline_mode = #tpu.pipeline_mode<synchronous>, transform_indices = @transform_0, window_bounds = array<i64: 256, 8>}, {transform_indices = @transform_1, window_bounds = array<i64: 3, 256, 256>}, {pipeline_mode = #tpu.pipeline_mode<synchronous>, transform_indices = @transform_2, window_bounds = array<i64: 3, 8, 16>}, {transform_indices = @transform_3, window_bounds = array<i64: 256, 16>}]} {
    %c0 = arith.constant 0 : index
    %c0_0 = arith.constant 0 : index
    %c0_1 = arith.constant 0 : index
    %0 = vector.load %arg2[%c0, %c0_0, %c0_1] : memref<3x256x256xbf16, #tpu.memory_space<vmem>>, vector<3x256x256xbf16>
    %1 = vector.shape_cast %0 : vector<3x256x256xbf16> to vector<768x256xbf16>
    %c0_2 = arith.constant 0 : index
    %c0_3 = arith.constant 0 : index
    %2 = vector.load %arg1[%c0_2, %c0_3] : memref<256x8xbf16, #tpu.memory_space<vmem>>, vector<256x8xbf16>
    %cst = arith.constant dense<0.000000e+00> : vector<768x8xf32>
    %3 = tpu.matmul %1, %2, %cst {dimension_numbers = #tpu.dot_dimension_numbers<[1], [0], [0], [1], [0, 0, 1, 1], [], []>} : vector<768x256xbf16>, vector<256x8xbf16>, vector<768x8xf32> -> vector<768x8xf32>
    %4 = vector.extract_strided_slice %3 {offsets = [0, 0], sizes = [256, 8], strides = [1, 1]} : vector<768x8xf32> to vector<256x8xf32>
    %5 = vector.extract_strided_slice %3 {offsets = [256, 0], sizes = [256, 8], strides = [1, 1]} : vector<768x8xf32> to vector<256x8xf32>
    %6 = vector.extract_strided_slice %3 {offsets = [512, 0], sizes = [256, 8], strides = [1, 1]} : vector<768x8xf32> to vector<256x8xf32>
    %cst_4 = arith.constant 0.000000e+00 : f32
    %7 = vector.broadcast %cst_4 : f32 to vector<256x16xf32>
    %c0_5 = arith.constant 0 : index
    %c0_6 = arith.constant 0 : index
    %c0_7 = arith.constant 0 : index
    %8 = vector.load %arg3[%c0_5, %c0_6, %c0_7] : memref<3x8x16xf32, #tpu.memory_space<vmem>>, vector<1x8x16xf32>
    %9 = vector.shape_cast %8 : vector<1x8x16xf32> to vector<8x16xf32>
    %cst_8 = arith.constant dense<0.000000e+00> : vector<256x16xf32>
    %10 = tpu.matmul %4, %9, %cst_8 {dimension_numbers = #tpu.dot_dimension_numbers<[1], [0], [0], [1], [0, 0, 1, 1], [], []>} : vector<256x8xf32>, vector<8x16xf32>, vector<256x16xf32> -> vector<256x16xf32>
    %11 = arith.addf %7, %10 : vector<256x16xf32>
    %c1 = arith.constant 1 : index
    %c0_9 = arith.constant 0 : index
    %c0_10 = arith.constant 0 : index
    %12 = vector.load %arg3[%c1, %c0_9, %c0_10] : memref<3x8x16xf32, #tpu.memory_space<vmem>>, vector<1x8x16xf32>
    %13 = vector.shape_cast %12 : vector<1x8x16xf32> to vector<8x16xf32>
    %cst_11 = arith.constant dense<0.000000e+00> : vector<256x16xf32>
    %14 = tpu.matmul %5, %13, %cst_11 {dimension_numbers = #tpu.dot_dimension_numbers<[1], [0], [0], [1], [0, 0, 1, 1], [], []>} : vector<256x8xf32>, vector<8x16xf32>, vector<256x16xf32> -> vector<256x16xf32>
    %15 = arith.addf %11, %14 : vector<256x16xf32>
    %c2 = arith.constant 2 : index
    %c0_12 = arith.constant 0 : index
    %c0_13 = arith.constant 0 : index
    %16 = vector.load %arg3[%c2, %c0_12, %c0_13] : memref<3x8x16xf32, #tpu.memory_space<vmem>>, vector<1x8x16xf32>
    %17 = vector.shape_cast %16 : vector<1x8x16xf32> to vector<8x16xf32>
    %cst_14 = arith.constant dense<0.000000e+00> : vector<256x16xf32>
    %18 = tpu.matmul %6, %17, %cst_14 {dimension_numbers = #tpu.dot_dimension_numbers<[1], [0], [0], [1], [0, 0, 1, 1], [], []>} : vector<256x8xf32>, vector<8x16xf32>, vector<256x16xf32> -> vector<256x16xf32>
    %19 = arith.addf %15, %18 : vector<256x16xf32>
    %cst_15 = arith.constant 0.000000e+00 : f32
    %20 = vector.broadcast %cst_15 : f32 to vector<256x16xf32>
    %21 = arith.maximumf %19, %20 : vector<256x16xf32>
    %c0_16 = arith.constant 0 : index
    %c0_17 = arith.constant 0 : index
    %22 = vector.load %arg4[%c0_16, %c0_17] : memref<256x16xf32, #tpu.memory_space<vmem>>, vector<256x16xf32>
    tpu.vector_store %arg4[%c0_16, %c0_17], %21 {strides = array<i32>} : memref<256x16xf32, #tpu.memory_space<vmem>>, vector<256x16xf32>,
    return
  }
  func.func @transform_0(%arg0: i32) -> (i32, i32) {
    %c0_i32 = arith.constant 0 : i32
    %c0_i32_0 = arith.constant 0 : i32
    %c0_i32_1 = arith.constant 0 : i32
    return %c0_i32, %c0_i32_0 : i32, i32
  }
  func.func @transform_1(%arg0: i32) -> (i32, i32, i32) {
    %c0_i32 = arith.constant 0 : i32
    %c0_i32_0 = arith.constant 0 : i32
    %c0_i32_1 = arith.constant 0 : i32
    return %c0_i32, %arg0, %c0_i32_0 : i32, i32, i32
  }
  func.func @transform_2(%arg0: i32) -> (i32, i32, i32) {
    %c0_i32 = arith.constant 0 : i32
    %c0_i32_0 = arith.constant 0 : i32
    %c0_i32_1 = arith.constant 0 : i32
    %c0_i32_2 = arith.constant 0 : i32
    return %c0_i32, %c0_i32_0, %c0_i32_1 : i32, i32, i32
  }
  func.func @transform_3(%arg0: i32) -> (i32, i32) {
    %c0_i32 = arith.constant 0 : i32
    %c0_i32_0 = arith.constant 0 : i32
    return %arg0, %c0_i32 : i32, i32
  }
}

</mosaic_0001>

<bundles_post_ra>
// kernel: tpu_custom_call.1
= control target key start
LH: loop header
LB: loop body
LE: loop exit
PB: predicated region body
PF: predicated region fallthrough
CT: control target
= control target key end

     0   :  { %8 = vsyncpa [#allocation3], 0  ;;  %s2964_s12 = smov [#allocation2]   ;;  %s3485_s0 = inlined_call_operand.vmem [shape: bf16[256,8], index: 0, kind: input, shape index: {}]   ;;  %s3486_s1 = inlined_call_operand.hbm [shape: bf16[3,256,256], index: 1, kind: input, shape index: {}]   ;;  %s3487_s2 = inlined_call_operand.vmem [shape: f32[3,8,16], index: 2, kind: input, shape index: {}]   ;;  %s3488_s3 = inlined_call_operand.vmem [shape: f32[256,16], index: 3, kind: output, shape index: {}]  }
   0x1   :  { %s16_s13 = sshll.u32 %s2964_s12, 4  ;;  %s2940_s16 = scalar_lea.hbm %s3486_s1, 12288  ;;  %s17_s13 = int_to_ptr.vmem [resolvable:$true] %s16_s13 }
   0x2   :  { %p2941_p0 = scmp.ne.s32.totalorder %s3486_s1, %s2940_s16  ;;  %p2944_p1 = scmp.lt.u32.totalorder %s2940_s16, %s3486_s1 }
   0x4   :  { %p2946_p2 = pnand %p2944_p1, %p2941_p0 }
   0x6   :  { %2949 = shalt.err (!%p2946_p2)
}
   0x7   :  { %s2950_s21 = scalar_lea.vmem %s17_s13, 12288  ;;  %p2955_p4 = scmp.lt.s32.totalorder %s17_s13, %s17_s13 }
   0x8   :  { %p2951_p3 = scmp.ne.s32.totalorder %s17_s13, %s2950_s21  ;;  %p2956_p5 = scmp.lt.s32.totalorder %s2950_s21, %s2950_s21 }
   0xa   :  { %p2957_p6 = por %p2956_p5, %p2955_p4 }
   0xc   :  { %p2958_p7 = pnand %p2957_p6, %p2951_p3 }
   0xe   :  { %2961 = shalt.err (!%p2958_p7)
}
   0xf   :  { %s2965_s22 = smov 128   ;;  %s2966_s23 = smov 8  }
  0x10   :  { %22 = dma.hbm_to_vmem [thread:$0]  %s3486_s1, 12288, %s17_s13, [#allocation3], %s2965_s22, %s2965_s22, %s2966_s23  }
  0x11   :  { %2962 = dma.done.wait [#allocation3], 12288  }
  0x12   :  { %2963 = vsyncadd [#allocation3], 4294955008  ;;  %v2967_v0 = vmov 0   ;;  %v2780_v1 = vld [vmem:[%s3485_s0] sm:$0xff]   ;;  %v2781_v2 = vld [vmem:[%s3485_s0 + $0x8] sm:$0xff]   ;;  %vm1153_vm0 = vcmask 64512  }
  0x13   :  { %733 = vmatprep.subr.bf16.mxu0 %v2967_v0  ;;  %2680 = vmatprep.subr.bf16.mxu1 %v2967_v0  ;;  %v2782_v3 = vld [vmem:[%s3485_s0 + $0x10] sm:$0xff]   ;;  %v2783_v4 = vld [vmem:[%s3485_s0 + $0x18] sm:$0xff]   ;;  %v2784_v5 = vld [vmem:[%s3485_s0 + $0x20] sm:$0xff]   ;;  %vm2183_vm1 = vcmask 130048  }
  0x14   :  { %734 = vmatpush1.bf16.msra.mxu0 %v2780_v1  ;;  %2696 = vmatpush1.bf16.msra.mxu1 %v2780_v1  ;;  %v2798_v6 = vld [vmem:[#allocation2 + $0x4] ss:$8 sps:$4 sm:$0xff]   ;;  %v2786_v8 = vld [vmem:[%s3485_s0 + $0x30] sm:$0xff]   ;;  %v2787_v9 = vld [vmem:[%s3485_s0 + $0x38] sm:$0xff]  }
  0x15   :  { %735 = vmatprep.subr.bf16.mxu0 %v2967_v0  ;;  %2681 = vmatprep.subr.bf16.mxu1 %v2967_v0  ;;  %v2785_v7 = vld [vmem:[%s3485_s0 + $0x28] sm:$0xff]   ;;  %v2788_v10 = vld [vmem:[%s3485_s0 + $0x40] sm:$0xff]   ;;  %v2790_v12 = vld [vmem:[%s3485_s0 + $0x50] sm:$0xff]  }
  0x16   :  { %765 = vmatprep.mubr.bf16.mxu0 %v2798_v6  ;;  %v2789_v11 = vld [vmem:[%s3485_s0 + $0x48] sm:$0xff]   ;;  %v2791_v13 = vld [vmem:[%s3485_s0 + $0x58] sm:$0xff]   ;;  %v2792_v14 = vld [vmem:[%s3485_s0 + $0x60] sm:$0xff]  }
  0x17   :  { %v2793_v15 = vld [vmem:[%s3485_s0 + $0x68] sm:$0xff]   ;;  %v2794_v16 = vld [vmem:[%s3485_s0 + $0x70] sm:$0xff]   ;;  %v2795_v17 = vld [vmem:[%s3485_s0 + $0x78] sm:$0xff]  }
  0x18   :  { %736 = vmatpush1.bf16.msra.mxu0 %v2781_v2  ;;  %2697 = vmatpush1.bf16.msra.mxu1 %v2781_v2  ;;  %v2796_v18 = vld [vmem:[#allocation2] ss:$8 sps:$4 sm:$0xff]   ;;  %v2799_v19 = vld [vmem:[#allocation2 + $0x14] ss:$8 sps:$4 sm:$0xff]   ;;  %v2801_v20 = vld [vmem:[#allocation2 + $0x10] ss:$8 sps:$4 sm:$0xff]  }
  0x19   :  { %737 = vmatprep.subr.bf16.mxu0 %v2967_v0  ;;  %2682 = vmatprep.subr.bf16.mxu1 %v2967_v0  ;;  %v2802_v21 = vld [vmem:[#allocation2 + $0x24] ss:$8 sps:$4 sm:$0xff]   ;;  %v2804_v22 = vld [vmem:[#allocation2 + $0x20] ss:$8 sps:$4 sm:$0xff]   ;;  %v2805_v23 = vld [vmem:[#allocation2 + $0x34] ss:$8 sps:$4 sm:$0xff]  }
  0x1a   :  { %v2807_v24 = vld [vmem:[#allocation2 + $0x30] ss:$8 sps:$4 sm:$0xff]   ;;  %v2808_v25 = vld [vmem:[#allocation2 + $0x44] ss:$8 sps:$4 sm:$0xff]   ;;  %v2810_v26 = vld [vmem:[#allocation2 + $0x40] ss:$8 sps:$4 sm:$0xff]  }
  0x1b   :  { %v2811_v27 = vld [vmem:[#allocation2 + $0x54] ss:$8 sps:$4 sm:$0xff]   ;;  %v2813_v28 = vld [vmem:[#allocation2 + $0x50] ss:$8 sps:$4 sm:$0xff]   ;;  %v2814_v29 = vld [vmem:[#allocation2 + $0x64] ss:$8 sps:$4 sm:$0xff]  }
  0x1c   :  { %738 = vmatpush1.bf16.msra.mxu0 %v2782_v3  ;;  %2698 = vmatpush1.bf16.msra.mxu1 %v2782_v3  ;;  %v2816_v30 = vld [vmem:[#allocation2 + $0x60] ss:$8 sps:$4 sm:$0xff]   ;;  %v2817_v31 = vld [vmem:[#allocation2 + $0x74] ss:$8 sps:$4 sm:$0xff]   ;;  %v2819_v32 = vld [vmem:[#allocation2 + $0x70] ss:$8 sps:$4 sm:$0xff]  }
  0x1d   :  { %739 = vmatprep.subr.bf16.mxu0 %v2967_v0  ;;  %2683 = vmatprep.subr.bf16.mxu1 %v2967_v0  ;;  %v2820_v33 = vld [vmem:[#allocation2 + $0x84] ss:$8 sps:$4 sm:$0xff]   ;;  %v2822_v34 = vld [vmem:[#allocation2 + $0x80] ss:$8 sps:$4 sm:$0xff]   ;;  %v2823_v35 = vld [vmem:[#allocation2 + $0x94] ss:$8 sps:$4 sm:$0xff]  }
  0x1e   :  { %v2825_v36 = vld [vmem:[#allocation2 + $0x90] ss:$8 sps:$4 sm:$0xff]   ;;  %v2826_v37 = vld [vmem:[#allocation2 + $0xa4] ss:$8 sps:$4 sm:$0xff]   ;;  %v2828_v38 = vld [vmem:[#allocation2 + $0xa0] ss:$8 sps:$4 sm:$0xff]  }
  0x1f   :  { %v2829_v39 = vld [vmem:[#allocation2 + $0xb4] ss:$8 sps:$4 sm:$0xff]   ;;  %v2831_v40 = vld [vmem:[#allocation2 + $0xb0] ss:$8 sps:$4 sm:$0xff]   ;;  %v2832_v41 = vld [vmem:[#allocation2 + $0xc4] ss:$8 sps:$4 sm:$0xff]  }
  0x20   :  { %740 = vmatpush1.bf16.msra.mxu0 %v2783_v4  ;;  %2699 = vmatpush1.bf16.msra.mxu1 %v2783_v4  ;;  %v2834_v42 = vld [vmem:[#allocation2 + $0xc0] ss:$8 sps:$4 sm:$0xff]   ;;  %v2835_v43 = vld [vmem:[#allocation2 + $0xd4] ss:$8 sps:$4 sm:$0xff]   ;;  %v2837_v44 = vld [vmem:[#allocation2 + $0xd0] ss:$8 sps:$4 sm:$0xff]  }
  0x21   :  { %741 = vmatprep.subr.bf16.mxu0 %v2967_v0  ;;  %2684 = vmatprep.subr.bf16.mxu1 %v2967_v0  ;;  %v2838_v45 = vld [vmem:[#allocation2 + $0xe4] ss:$8 sps:$4 sm:$0xff]   ;;  %v2840_v46 = vld [vmem:[#allocation2 + $0xe0] ss:$8 sps:$4 sm:$0xff]   ;;  %v2841_v47 = vld [vmem:[#allocation2 + $0xf4] ss:$8 sps:$4 sm:$0xff]  }
  0x22   :  { %v2891_v48 = vld [vmem:[#allocation2 + $0x244] ss:$8 sps:$4 sm:$0xff]   ;;  %v2843_v49 = vld [vmem:[#allocation2 + $0xf0] ss:$8 sps:$4 sm:$0xff]   ;;  %v2889_v50 = vld [vmem:[#allocation2 + $0x240] ss:$8 sps:$4 sm:$0xff]  }
  0x23   :  { %v2844_v51 = vld [vmem:[#allocation2 + $0x104] ss:$8 sps:$4 sm:$0xff]   ;;  %1053 = vmatprep.mubr.bf16.mxu1 %v2891_v48  ;;  %v2895_v52 = vld [vmem:[#allocation2 + $0x254] ss:$8 sps:$4 sm:$0xff]   ;;  %v2846_v53 = vld [vmem:[#allocation2 + $0x100] ss:$8 sps:$4 sm:$0xff]  }
  0x24   :  { %742 = vmatpush1.bf16.msra.mxu0 %v2784_v5  ;;  %2700 = vmatpush1.bf16.msra.mxu1 %v2784_v5  ;;  %v2897_v54 = vld [vmem:[#allocation2 + $0x250] ss:$8 sps:$4 sm:$0xff]   ;;  %v2847_v55 = vld [vmem:[#allocation2 + $0x114] ss:$8 sps:$4 sm:$0xff]   ;;  %v2898_v56 = vld [vmem:[#allocation2 + $0x264] ss:$8 sps:$4 sm:$0xff]  }
  0x25   :  { %743 = vmatprep.subr.bf16.mxu0 %v2967_v0  ;;  %2685 = vmatprep.subr.bf16.mxu1 %v2967_v0  ;;  %v2849_v57 = vld [vmem:[#allocation2 + $0x110] ss:$8 sps:$4 sm:$0xff]   ;;  %v2900_v58 = vld [vmem:[#allocation2 + $0x260] ss:$8 sps:$4 sm:$0xff]   ;;  %v2850_v59 = vld [vmem:[#allocation2 + $0x124] ss:$8 sps:$4 sm:$0xff]  }
  0x26   :  { %v2901_v60 = vld [vmem:[#allocation2 + $0x274] ss:$8 sps:$4 sm:$0xff]   ;;  %v2852_v61 = vld [vmem:[#allocation2 + $0x120] ss:$8 sps:$4 sm:$0xff]   ;;  %v2903_v62 = vld [vmem:[#allocation2 + $0x270] ss:$8 sps:$4 sm:$0xff]  }
  0x27   :  { %v2853_v63 = vld [vmem:[#allocation2 + $0x134] ss:$8 sps:$4 sm:$0xff]   ;;  %v2855_v1 = vld [vmem:[#allocation2 + $0x130] ss:$8 sps:$4 sm:$0xff]   ;;  %v2906_v2 = vld [vmem:[#allocation2 + $0x280] ss:$8 sps:$4 sm:$0xff]  }
  0x28   :  { %744 = vmatpush1.bf16.msra.mxu0 %v2785_v7  ;;  %2701 = vmatpush1.bf16.msra.mxu1 %v2785_v7  ;;  %v2856_v3 = vld [vmem:[#allocation2 + $0x144] ss:$8 sps:$4 sm:$0xff]   ;;  %v2907_v4 = vld [vmem:[#allocation2 + $0x294] ss:$8 sps:$4 sm:$0xff]   ;;  %v2858_v5 = vld [vmem:[#allocation2 + $0x140] ss:$8 sps:$4 sm:$0xff]  }
  0x29   :  { %745 = vmatprep.subr.bf16.mxu0 %v2967_v0  ;;  %2686 = vmatprep.subr.bf16.mxu1 %v2967_v0  ;;  %v2909_v6 = vld [vmem:[#allocation2 + $0x290] ss:$8 sps:$4 sm:$0xff]   ;;  %v2859_v7 = vld [vmem:[#allocation2 + $0x154] ss:$8 sps:$4 sm:$0xff]  }
  0x2c   :  { %746 = vmatpush1.bf16.msra.mxu0 %v2786_v8  ;;  %2702 = vmatpush1.bf16.msra.mxu1 %v2786_v8  ;;  %v2910_v8 = vld [vmem:[#allocation2 + $0x2a4] ss:$8 sps:$4 sm:$0xff]  }
  0x2d   :  { %747 = vmatprep.subr.bf16.mxu0 %v2967_v0  ;;  %2687 = vmatprep.subr.bf16.mxu1 %v2967_v0 }
  0x30   :  { %748 = vmatpush1.bf16.msra.mxu0 %v2787_v9  ;;  %2703 = vmatpush1.bf16.msra.mxu1 %v2787_v9  ;;  %v2861_v9 = vld [vmem:[#allocation2 + $0x150] ss:$8 sps:$4 sm:$0xff]  }
  0x31   :  { %749 = vmatprep.subr.bf16.mxu0 %v2967_v0  ;;  %2688 = vmatprep.subr.bf16.mxu1 %v2967_v0 }
  0x34   :  { %750 = vmatpush1.bf16.msra.mxu0 %v2788_v10  ;;  %2704 = vmatpush1.bf16.msra.mxu1 %v2788_v10  ;;  %v2912_v10 = vld [vmem:[#allocation2 + $0x2a0] ss:$8 sps:$4 sm:$0xff]  }
  0x35   :  { %751 = vmatprep.subr.bf16.mxu0 %v2967_v0  ;;  %2689 = vmatprep.subr.bf16.mxu1 %v2967_v0 }
  0x38   :  { %752 = vmatpush1.bf16.msra.mxu0 %v2789_v11  ;;  %2705 = vmatpush1.bf16.msra.mxu1 %v2789_v11  ;;  %v2862_v11 = vld [vmem:[#allocation2 + $0x164] ss:$8 sps:$4 sm:$0xff]  }
  0x39   :  { %753 = vmatprep.subr.bf16.mxu0 %v2967_v0  ;;  %2690 = vmatprep.subr.bf16.mxu1 %v2967_v0 }
  0x3c   :  { %754 = vmatpush1.bf16.msra.mxu0 %v2790_v12  ;;  %2706 = vmatpush1.bf16.msra.mxu1 %v2790_v12  ;;  %v2916_v12 = vld [vmem:[#allocation2 + $0x2b4] ss:$8 sps:$4 sm:$0xff]  }
  0x3d   :  { %755 = vmatprep.subr.bf16.mxu0 %v2967_v0  ;;  %2691 = vmatprep.subr.bf16.mxu1 %v2967_v0 }
  0x40   :  { %756 = vmatpush1.bf16.msra.mxu0 %v2791_v13  ;;  %2707 = vmatpush1.bf16.msra.mxu1 %v2791_v13  ;;  %v2864_v13 = vld [vmem:[#allocation2 + $0x160] ss:$8 sps:$4 sm:$0xff]  }
  0x41   :  { %757 = vmatprep.subr.bf16.mxu0 %v2967_v0  ;;  %2692 = vmatprep.subr.bf16.mxu1 %v2967_v0 }
  0x44   :  { %758 = vmatpush1.bf16.msra.mxu0 %v2792_v14  ;;  %2708 = vmatpush1.bf16.msra.mxu1 %v2792_v14  ;;  %v2918_v14 = vld [vmem:[#allocation2 + $0x2b0] ss:$8 sps:$4 sm:$0xff]  }
  0x45   :  { %759 = vmatprep.subr.bf16.mxu0 %v2967_v0  ;;  %2693 = vmatprep.subr.bf16.mxu1 %v2967_v0 }
  0x48   :  { %760 = vmatpush1.bf16.msra.mxu0 %v2793_v15  ;;  %2709 = vmatpush1.bf16.msra.mxu1 %v2793_v15  ;;  %v2865_v15 = vld [vmem:[#allocation2 + $0x174] ss:$8 sps:$4 sm:$0xff]  }
  0x49   :  { %761 = vmatprep.subr.bf16.mxu0 %v2967_v0  ;;  %2694 = vmatprep.subr.bf16.mxu1 %v2967_v0 }
  0x4c   :  { %762 = vmatpush1.bf16.msra.mxu0 %v2794_v16  ;;  %2710 = vmatpush1.bf16.msra.mxu1 %v2794_v16  ;;  %v2333_v16 = vld [vmem:[%s3487_s2 + $0x8] sm:$0xff] }
  0x4d   :  { %763 = vmatprep.subr.bf16.mxu0 %v2967_v0  ;;  %2695 = vmatprep.subr.bf16.mxu1 %v2967_v0  ;;  %v2904_v0 = vld [vmem:[#allocation2 + $0x284] ss:$8 sps:$4 sm:$0xff]  }
  0x50   :  { %764 = vmatpush1.bf16.msra.mxu0 %v2795_v17  ;;  %2711 = vmatpush1.bf16.msra.mxu1 %v2795_v17  ;;  %v2922_v17 = vld [vmem:[#allocation2 + $0x2c4] ss:$8 sps:$4 sm:$0xff]  }
  0x51   :  { %2530 = vmatprep.subr.mxu1 %v2333_v16 }
  0x53   :  { %766 = vmatmul.mubr.bf16.vlgmr.msra.gmra.mrb[0].mxu0 %v2796_v18  ;;  %1054 = vmatmul.mubr.bf16.vlgmr.msra.gmra.mrb[0].mxu1 %v2889_v50  ;;  %v2867_v18 = vld [vmem:[#allocation2 + $0x170] ss:$8 sps:$4 sm:$0xff]  }
  0x54   :  { %773 = vmatprep.mubr.bf16.mxu0 %v2799_v19  ;;  %1061 = vmatprep.mubr.bf16.mxu1 %v2895_v52  ;;  %v2924_v19 = vld [vmem:[#allocation2 + $0x2c0] ss:$8 sps:$4 sm:$0xff]  }
  0x55   :  { %2531 = vmatpush3.msra.mxu1 %v2333_v16 }
  0x5b   :  { %774 = vmatmul.mubr.bf16.gmra.mrb[4].mxu0 %v2801_v20  ;;  %1062 = vmatmul.mubr.bf16.gmra.mrb[4].mxu1 %v2897_v54  ;;  %v2868_v20 = vld [vmem:[#allocation2 + $0x184] ss:$8 sps:$4 sm:$0xff]  }
  0x5c   :  { %781 = vmatprep.mubr.bf16.mxu0 %v2802_v21  ;;  %1069 = vmatprep.mubr.bf16.mxu1 %v2898_v56  ;;  %v2928_v21 = vld [vmem:[#allocation2 + $0x2d4] ss:$8 sps:$4 sm:$0xff]  }
  0x63   :  { %782 = vmatmul.mubr.bf16.gmra.mrb[8].mxu0 %v2804_v22  ;;  %1070 = vmatmul.mubr.bf16.gmra.mrb[8].mxu1 %v2900_v58  ;;  %v2870_v22 = vld [vmem:[#allocation2 + $0x180] ss:$8 sps:$4 sm:$0xff]  }
  0x64   :  { %789 = vmatprep.mubr.bf16.mxu0 %v2805_v23  ;;  %1077 = vmatprep.mubr.bf16.mxu1 %v2901_v60  ;;  %v2930_v23 = vld [vmem:[#allocation2 + $0x2d0] ss:$8 sps:$4 sm:$0xff]  }
  0x6b   :  { %790 = vmatmul.mubr.bf16.gmra.mrb[12].mxu0 %v2807_v24  ;;  %1078 = vmatmul.mubr.bf16.gmra.mrb[12].mxu1 %v2903_v62  ;;  %v2871_v24 = vld [vmem:[#allocation2 + $0x194] ss:$8 sps:$4 sm:$0xff]  }
  0x6c   :  { %797 = vmatprep.mubr.bf16.mxu0 %v2808_v25  ;;  %1085 = vmatprep.mubr.bf16.mxu1 %v2904_v0  ;;  %v2934_v25 = vld [vmem:[#allocation2 + $0x2e4] ss:$8 sps:$4 sm:$0xff]  }
  0x73   :  { %798 = vmatmul.mubr.bf16.gmra.mrb[16].mxu0 %v2810_v26  ;;  %1086 = vmatmul.mubr.bf16.gmra.mrb[16].mxu1 %v2906_v2  ;;  %v2873_v26 = vld [vmem:[#allocation2 + $0x190] ss:$8 sps:$4 sm:$0xff]  }
  0x74   :  { %805 = vmatprep.mubr.bf16.mxu0 %v2811_v27  ;;  %1093 = vmatprep.mubr.bf16.mxu1 %v2907_v4  ;;  %v2936_v27 = vld [vmem:[#allocation2 + $0x2e0] ss:$8 sps:$4 sm:$0xff]  }
  0x7b   :  { %806 = vmatmul.mubr.bf16.gmra.mrb[20].mxu0 %v2813_v28  ;;  %1094 = vmatmul.mubr.bf16.gmra.mrb[20].mxu1 %v2909_v6  ;;  %v2874_v28 = vld [vmem:[#allocation2 + $0x1a4] ss:$8 sps:$4 sm:$0xff]  }
  0x7c   :  { %813 = vmatprep.mubr.bf16.mxu0 %v2814_v29  ;;  %1101 = vmatprep.mubr.bf16.mxu1 %v2910_v8  ;;  %v2937_v29 = vld [vmem:[#allocation2 + $0x2f4] ss:$8 sps:$4 sm:$0xff]  }
  0x83   :  { %814 = vmatmul.mubr.bf16.gmra.mrb[24].mxu0 %v2816_v30  ;;  %1102 = vmatmul.mubr.bf16.gmra.mrb[24].mxu1 %v2912_v10  ;;  %v2876_v30 = vld [vmem:[#allocation2 + $0x1a0] ss:$8 sps:$4 sm:$0xff]  }
  0x84   :  { %821 = vmatprep.mubr.bf16.mxu0 %v2817_v31  ;;  %1109 = vmatprep.mubr.bf16.mxu1 %v2916_v12  ;;  %v2939_v31 = vld [vmem:[#allocation2 + $0x2f0] ss:$8 sps:$4 sm:$0xff]  }
  0x8b   :  { %822 = vmatmul.mubr.bf16.gmra.mrb[28].mxu0 %v2819_v32  ;;  %1110 = vmatmul.mubr.bf16.gmra.mrb[28].mxu1 %v2918_v14  ;;  %v2877_v32 = vld [vmem:[#allocation2 + $0x1b4] ss:$8 sps:$4 sm:$0xff]  }
  0x8c   :  { %829 = vmatprep.mubr.bf16.mxu0 %v2820_v33  ;;  %1117 = vmatprep.mubr.bf16.mxu1 %v2922_v17  ;;  %v1150_v17 = vld [vmem:[%s3487_s2] sm:$0xff] }
  0x8d   :  { %2580 = vmatprep.subr.mxu1 %v1150_v17 }
  0x93   :  { %830 = vmatmul.mubr.bf16.gmra.mrb[32].mxu0 %v2822_v34  ;;  %1118 = vmatmul.mubr.bf16.gmra.mrb[32].mxu1 %v2924_v19 }
  0x94   :  { %837 = vmatprep.mubr.bf16.mxu0 %v2823_v35  ;;  %1125 = vmatprep.mubr.bf16.mxu1 %v2928_v21  ;;  %v2879_v35 = vld [vmem:[#allocation2 + $0x1b0] ss:$8 sps:$4 sm:$0xff]  }
  0x9b   :  { %838 = vmatmul.mubr.bf16.gmra.mrb[36].mxu0 %v2825_v36  ;;  %1126 = vmatmul.mubr.bf16.gmra.mrb[36].mxu1 %v2930_v23 }
  0x9c   :  { %845 = vmatprep.mubr.bf16.mxu0 %v2826_v37  ;;  %1133 = vmatprep.mubr.bf16.mxu1 %v2934_v25  ;;  %v2880_v37 = vld [vmem:[#allocation2 + $0x1c4] ss:$8 sps:$4 sm:$0xff]  }
  0xa3   :  { %846 = vmatmul.mubr.bf16.gmra.mrb[40].mxu0 %v2828_v38  ;;  %1134 = vmatmul.mubr.bf16.gmra.mrb[40].mxu1 %v2936_v27 }
  0xa4   :  { %853 = vmatprep.mubr.bf16.mxu0 %v2829_v39  ;;  %1141 = vmatprep.mubr.bf16.mxu1 %v2937_v29 }
  0xab   :  { %854 = vmatmul.mubr.bf16.gmra.mrb[44].mxu0 %v2831_v40  ;;  %1142 = vmatmul.mubr.bf16.gmra.mrb[44].mxu1 %v2939_v31 }
  0xac   :  { %861 = vmatprep.mubr.bf16.mxu0 %v2832_v41  ;;  %v2882_v41 = vld [vmem:[#allocation2 + $0x1c0] ss:$8 sps:$4 sm:$0xff]  }
  0xb3   :  { %862 = vmatmul.mubr.bf16.gmra.mrb[48].mxu0 %v2834_v42 }
  0xb4   :  { %869 = vmatprep.mubr.bf16.mxu0 %v2835_v43  ;;  %v2883_v43 = vld [vmem:[#allocation2 + $0x1d4] ss:$8 sps:$4 sm:$0xff]  }
  0xbb   :  { %870 = vmatmul.mubr.bf16.gmra.mrb[52].mxu0 %v2837_v44 }
  0xbc   :  { %877 = vmatprep.mubr.bf16.mxu0 %v2838_v45 }
  0xc3   :  { %878 = vmatmul.mubr.bf16.gmra.mrb[56].mxu0 %v2840_v46 }
  0xc4   :  { %885 = vmatprep.mubr.bf16.mxu0 %v2841_v47  ;;  %v2885_v47 = vld [vmem:[#allocation2 + $0x1d0] ss:$8 sps:$4 sm:$0xff]  }
  0xcb   :  { %886 = vmatmul.mubr.bf16.gmra.mrb[60].mxu0 %v2843_v49  ;;  %v2886_v49 = vld [vmem:[#allocation2 + $0x1e4] ss:$8 sps:$4 sm:$0xff]  }
  0xcc   :  { %893 = vmatprep.mubr.bf16.mxu0 %v2844_v51 }
  0xd3   :  { %894 = vmatmul.mubr.bf16.gmra.mrb[64].mxu0 %v2846_v53  ;;  %v2888_v53 = vld [vmem:[#allocation2 + $0x1e0] ss:$8 sps:$4 sm:$0xff]  }
  0xd4   :  { %901 = vmatprep.mubr.bf16.mxu0 %v2847_v55  ;;  %v2892_v55 = vld [vmem:[#allocation2 + $0x1f4] ss:$8 sps:$4 sm:$0xff]  }
  0xdb   :  { %902 = vmatmul.mubr.bf16.gmra.mrb[68].mxu0 %v2849_v57 }
  0xdc   :  { %909 = vmatprep.mubr.bf16.mxu0 %v2850_v59  ;;  %v2894_v59 = vld [vmem:[#allocation2 + $0x1f0] ss:$8 sps:$4 sm:$0xff]  }
  0xe3   :  { %910 = vmatmul.mubr.bf16.gmra.mrb[72].mxu0 %v2852_v61  ;;  %v2913_v61 = vld [vmem:[#allocation2 + $0x204] ss:$8 sps:$4 sm:$0xff]  }
  0xe4   :  { %917 = vmatprep.mubr.bf16.mxu0 %v2853_v63 }
  0xeb   :  { %918 = vmatmul.mubr.bf16.gmra.mrb[76].mxu0 %v2855_v1  ;;  %v2915_v1 = vld [vmem:[#allocation2 + $0x200] ss:$8 sps:$4 sm:$0xff]  }
  0xec   :  { %925 = vmatprep.mubr.bf16.mxu0 %v2856_v3  ;;  %v2919_v3 = vld [vmem:[#allocation2 + $0x214] ss:$8 sps:$4 sm:$0xff]  }
  0xf3   :  { %926 = vmatmul.mubr.bf16.gmra.mrb[80].mxu0 %v2858_v5 }
  0xf4   :  { %933 = vmatprep.mubr.bf16.mxu0 %v2859_v7  ;;  %v2921_v7 = vld [vmem:[#allocation2 + $0x210] ss:$8 sps:$4 sm:$0xff]  }
  0xfb   :  { %934 = vmatmul.mubr.bf16.gmra.mrb[84].mxu0 %v2861_v9  ;;  %v2925_v9 = vld [vmem:[#allocation2 + $0x224] ss:$8 sps:$4 sm:$0xff]  }
  0xfc   :  { %941 = vmatprep.mubr.bf16.mxu0 %v2862_v11 }
 0x103   :  { %942 = vmatmul.mubr.bf16.gmra.mrb[88].mxu0 %v2864_v13  ;;  %v2927_v13 = vld [vmem:[#allocation2 + $0x220] ss:$8 sps:$4 sm:$0xff]  }
 0x104   :  { %949 = vmatprep.mubr.bf16.mxu0 %v2865_v15  ;;  %v2931_v15 = vld [vmem:[#allocation2 + $0x234] ss:$8 sps:$4 sm:$0xff]  }
 0x10b   :  { %950 = vmatmul.mubr.bf16.gmra.mrb[92].mxu0 %v2867_v18 }
 0x10c   :  { %957 = vmatprep.mubr.bf16.mxu0 %v2868_v20  ;;  %v2933_v20 = vld [vmem:[#allocation2 + $0x230] ss:$8 sps:$4 sm:$0xff]  }
 0x113   :  { %958 = vmatmul.mubr.bf16.gmra.mrb[96].mxu0 %v2870_v22 }
 0x114   :  { %965 = vmatprep.mubr.bf16.mxu0 %v2871_v24 }
 0x11b   :  { %966 = vmatmul.mubr.bf16.gmra.mrb[100].mxu0 %v2873_v26 }
 0x11c   :  { %973 = vmatprep.mubr.bf16.mxu0 %v2874_v28 }
 0x123   :  { %974 = vmatmul.mubr.bf16.gmra.mrb[104].mxu0 %v2876_v30 }
 0x124   :  { %981 = vmatprep.mubr.bf16.mxu0 %v2877_v32 }
 0x126   :  { %v3083_v33 = vpop.f32.mrb[0].mxu0 }
 0x127   :  { %v769_v34 = vpop.f32.mrb[1].mxu0 }
 0x128   :  { %v3085_v36 = vpop.f32.mrb[2].mxu0 }
 0x129   :  { %v772_v38 = vpop.f32.mrb[3].mxu0 }
 0x12b   :  { %982 = vmatmul.mubr.bf16.gmra.mrb[108].mxu0 %v2879_v35 }
 0x12c   :  { %989 = vmatprep.mubr.bf16.mxu0 %v2880_v37 }
 0x12e   :  { %v3087_v39 = vpop.f32.mrb[4].mxu0 }
 0x12f   :  { %v777_v40 = vpop.f32.mrb[5].mxu0 }
 0x130   :  { %v3089_v42 = vpop.f32.mrb[6].mxu0 }
 0x131   :  { %v780_v44 = vpop.f32.mrb[7].mxu0 }
 0x133   :  { %990 = vmatmul.mubr.bf16.gmra.mrb[112].mxu0 %v2882_v41 }
 0x134   :  { %997 = vmatprep.mubr.bf16.mxu0 %v2883_v43 }
 0x136   :  { %v3091_v45 = vpop.f32.mrb[8].mxu0 }
 0x137   :  { %v785_v46 = vpop.f32.mrb[9].mxu0 }
 0x138   :  { %v3093_v48 = vpop.f32.mrb[10].mxu0 }
 0x139   :  { %v788_v50 = vpop.f32.mrb[11].mxu0 }
 0x13b   :  { %998 = vmatmul.mubr.bf16.gmra.mrb[116].mxu0 %v2885_v47 }
 0x13c   :  { %1005 = vmatprep.mubr.bf16.mxu0 %v2886_v49 }
 0x13e   :  { %v3095_v51 = vpop.f32.mrb[12].mxu0 }
 0x13f   :  { %v793_v52 = vpop.f32.mrb[13].mxu0 }
 0x140   :  { %v3097_v54 = vpop.f32.mrb[14].mxu0 }
 0x141   :  { %v796_v56 = vpop.f32.mrb[15].mxu0 }
 0x143   :  { %1006 = vmatmul.mubr.bf16.gmra.mrb[120].mxu0 %v2888_v53 }
 0x144   :  { %1013 = vmatprep.mubr.bf16.mxu0 %v2892_v55 }
 0x146   :  { %v3099_v57 = vpop.f32.mrb[16].mxu0 }
 0x147   :  { %v801_v58 = vpop.f32.mrb[17].mxu0 }
 0x148   :  { %v3101_v60 = vpop.f32.mrb[18].mxu0 }
 0x149   :  { %v804_v62 = vpop.f32.mrb[19].mxu0 }
 0x14b   :  { %1014 = vmatmul.mubr.bf16.gmra.mrb[124].mxu0 %v2894_v59 }
 0x14c   :  { %1021 = vmatprep.mubr.bf16.mxu0 %v2913_v61 }
 0x14e   :  { %v3103_v63 = vpop.f32.mrb[20].mxu0 }
 0x14f   :  { %v809_v0 = vpop.f32.mrb[21].mxu0 }
 0x150   :  { %v3105_v2 = vpop.f32.mrb[22].mxu0 }
 0x151   :  { %v812_v4 = vpop.f32.mrb[23].mxu0 }
 0x153   :  { %1022 = vmatmul.mubr.bf16.gmra.mrb[128].mxu0 %v2915_v1  ;;  %v3154_v1 = vld [vmem:[%s3487_s2 + $0x10] sm:$0xff] }
 0x154   :  { %1029 = vmatprep.mubr.bf16.mxu0 %v2919_v3 }
 0x156   :  { %v3107_v5 = vpop.f32.mrb[24].mxu0 }
 0x157   :  { %v817_v6 = vpop.f32.mrb[25].mxu0 }
 0x158   :  { %v3109_v8 = vpop.f32.mrb[26].mxu0 }
 0x159   :  { %v820_v10 = vpop.f32.mrb[27].mxu0 }
 0x15b   :  { %1030 = vmatmul.mubr.bf16.gmra.mrb[132].mxu0 %v2921_v7 }
 0x15c   :  { %1037 = vmatprep.mubr.bf16.mxu0 %v2925_v9 }
 0x15e   :  { %v3111_v11 = vpop.f32.mrb[28].mxu0 }
 0x15f   :  { %v825_v12 = vpop.f32.mrb[29].mxu0 }
 0x160   :  { %v3113_v14 = vpop.f32.mrb[30].mxu0 }
 0x161   :  { %v828_v16 = vpop.f32.mrb[31].mxu0 }
 0x163   :  { %1038 = vmatmul.mubr.bf16.gmra.mrb[136].mxu0 %v2927_v13 }
 0x164   :  { %1045 = vmatprep.mubr.bf16.mxu0 %v2931_v15 }
 0x166   :  { %v3118_v18 = vpop.f32.mrb[32].mxu0 }
 0x167   :  { %v833_v19 = vpop.f32.mrb[33].mxu0 }
 0x168   :  { %v3120_v21 = vpop.f32.mrb[34].mxu0 }
 0x169   :  { %v836_v22 = vpop.f32.mrb[35].mxu0 }
 0x16a   :  { %v3164_v22 = vpop.f32.mrb[0].mxu1 }
 0x16b   :  { %1046 = vmatmul.mubr.bf16.gmra.mrb[140].mxu0 %v2933_v20 }
 0x16e   :  { %v3122_v23 = vpop.f32.mrb[36].mxu0 }
 0x16f   :  { %v841_v24 = vpop.f32.mrb[37].mxu0 }
 0x170   :  { %v3124_v25 = vpop.f32.mrb[38].mxu0  ;;  %v1057_v24 = vpop.f32.mrb[1].mxu1 }
 0x171   :  { %v844_v26 = vpop.f32.mrb[39].mxu0 }
 0x172   :  { %v3166_v26 = vpop.f32.mrb[2].mxu1 }
 0x176   :  { %v3126_v27 = vpop.f32.mrb[40].mxu0 }
 0x177   :  { %v849_v28 = vpop.f32.mrb[41].mxu0 }
 0x178   :  { %v3128_v29 = vpop.f32.mrb[42].mxu0  ;;  %v1060_v28 = vpop.f32.mrb[3].mxu1 }
 0x179   :  { %v852_v30 = vpop.f32.mrb[43].mxu0 }
 0x17e   :  { %v3130_v31 = vpop.f32.mrb[44].mxu0 }
 0x17f   :  { %v857_v32 = vpop.f32.mrb[45].mxu0 }
 0x180   :  { %v3132_v34 = vpop.f32.mrb[46].mxu0 }
 0x181   :  { %v860_v35 = vpop.f32.mrb[47].mxu0 }
 0x186   :  { %v3134_v37 = vpop.f32.mrb[48].mxu0 }
 0x187   :  { %v865_v38 = vpop.f32.mrb[49].mxu0 }
 0x188   :  { %v3136_v40 = vpop.f32.mrb[50].mxu0 }
 0x189   :  { %v868_v41 = vpop.f32.mrb[51].mxu0 }
 0x18a   :  { %v3170_v41 = vpop.f32.mrb[4].mxu1 }
 0x18e   :  { %v3138_v43 = vpop.f32.mrb[52].mxu0 }
 0x18f   :  { %v873_v44 = vpop.f32.mrb[53].mxu0 }
 0x190   :  { %v3140_v46 = vpop.f32.mrb[54].mxu0  ;;  %v1065_v44 = vpop.f32.mrb[5].mxu1 }
 0x191   :  { %v876_v47 = vpop.f32.mrb[55].mxu0 }
 0x192   :  { %v3172_v47 = vpop.f32.mrb[6].mxu1 }
 0x196   :  { %v3142_v49 = vpop.f32.mrb[56].mxu0 }
 0x197   :  { %v881_v50 = vpop.f32.mrb[57].mxu0 }
 0x198   :  { %v3144_v52 = vpop.f32.mrb[58].mxu0  ;;  %v1068_v50 = vpop.f32.mrb[7].mxu1 }
 0x199   :  { %v884_v53 = vpop.f32.mrb[59].mxu0 }
 0x19e   :  { %v3146_v55 = vpop.f32.mrb[60].mxu0 }
 0x19f   :  { %v889_v56 = vpop.f32.mrb[61].mxu0 }
 0x1a0   :  { %v3148_v58 = vpop.f32.mrb[62].mxu0 }
 0x1a1   :  { %v892_v59 = vpop.f32.mrb[63].mxu0 }
 0x1a6   :  { %v895_v61 = vpop.f32.mrb[64].mxu0 }
 0x1a7   :  { %v897_v62 = vpop.f32.mrb[65].mxu0  ;;  %2532 = vmatprep.mubr.msk.f32.mxu1 %vm1153_vm0, %v895_v61 }
 0x1a8   :  { %v898_v0 = vpop.f32.mrb[66].mxu0  ;;  %v3176_v62 = vpop.f32.mrb[8].mxu1 }
 0x1a9   :  { %v900_v3 = vpop.f32.mrb[67].mxu0  ;;  %2533 = vmatmul.mubr.msk.f32.vlgmr.msra.gmra.mrb[48].mxu1 %vm1153_vm0, %v898_v0  ;;  %v1073_v0 = vpop.f32.mrb[9].mxu1 }
 0x1aa   :  { %2581 = vmatpush3.msra.mxu1 %v1150_v17  ;;  %v3178_v3 = vpop.f32.mrb[10].mxu1 }
 0x1ab   :  { %2630 = vmatprep.subr.mxu1 %v3154_v1 }
 0x1ae   :  { %v903_v4 = vpop.f32.mrb[68].mxu0 }
 0x1af   :  { %v905_v6 = vpop.f32.mrb[69].mxu0  ;;  %2535 = vmatprep.mubr.msk.f32.mxu1 %vm1153_vm0, %v903_v4  ;;  %v1076_v4 = vpop.f32.mrb[11].mxu1 }
 0x1b0   :  { %v906_v7 = vpop.f32.mrb[70].mxu0 }
 0x1b1   :  { %v908_v9 = vpop.f32.mrb[71].mxu0  ;;  %2536 = vmatmul.mubr.msk.f32.gmra.mrb[50].mxu1 %vm1153_vm0, %v906_v7 }
 0x1b6   :  { %v911_v10 = vpop.f32.mrb[72].mxu0 }
 0x1b7   :  { %v913_v12 = vpop.f32.mrb[73].mxu0  ;;  %2538 = vmatprep.mubr.msk.f32.mxu1 %vm1153_vm0, %v911_v10 }
 0x1b8   :  { %v914_v13 = vpop.f32.mrb[74].mxu0  ;;  %v3182_v12 = vpop.f32.mrb[12].mxu1 }
 0x1b9   :  { %v916_v15 = vpop.f32.mrb[75].mxu0  ;;  %2539 = vmatmul.mubr.msk.f32.gmra.mrb[52].mxu1 %vm1153_vm0, %v914_v13  ;;  %v1081_v13 = vpop.f32.mrb[13].mxu1 }
 0x1ba   :  { %v3184_v15 = vpop.f32.mrb[14].mxu1 }
 0x1be   :  { %v919_v16 = vpop.f32.mrb[76].mxu0 }
 0x1bf   :  { %v921_v17 = vpop.f32.mrb[77].mxu0  ;;  %2541 = vmatprep.mubr.msk.f32.mxu1 %vm1153_vm0, %v919_v16  ;;  %v1084_v16 = vpop.f32.mrb[15].mxu1 }
 0x1c0   :  { %v922_v19 = vpop.f32.mrb[78].mxu0  ;;  %v3188_v28 = vpop.f32.mrb[16].mxu1 }
 0x1c1   :  { %v924_v20 = vpop.f32.mrb[79].mxu0  ;;  %2542 = vmatmul.mubr.msk.f32.gmra.mrb[54].mxu1 %vm1153_vm0, %v922_v19 }
 0x1c6   :  { %v927_v30 = vpop.f32.mrb[80].mxu0 }
 0x1c7   :  { %v929_v32 = vpop.f32.mrb[81].mxu0  ;;  %2544 = vmatprep.mubr.msk.f32.mxu1 %vm1153_vm0, %v927_v30  ;;  %v1089_v30 = vpop.f32.mrb[17].mxu1 }
 0x1c8   :  { %v930_v35 = vpop.f32.mrb[82].mxu0  ;;  %v3190_v32 = vpop.f32.mrb[18].mxu1 }
 0x1c9   :  { %v932_v38 = vpop.f32.mrb[83].mxu0  ;;  %2545 = vmatmul.mubr.msk.f32.gmra.mrb[56].mxu1 %vm1153_vm0, %v930_v35  ;;  %v1092_v35 = vpop.f32.mrb[19].mxu1 }
 0x1ce   :  { %v935_v53 = vpop.f32.mrb[84].mxu0 }
 0x1cf   :  { %v937_v56 = vpop.f32.mrb[85].mxu0  ;;  %2547 = vmatprep.mubr.msk.f32.mxu1 %vm1153_vm0, %v935_v53 }
 0x1d0   :  { %v938_v59 = vpop.f32.mrb[86].mxu0  ;;  %v3194_v56 = vpop.f32.mrb[20].mxu1 }
 0x1d1   :  { %v940_v61 = vpop.f32.mrb[87].mxu0  ;;  %2548 = vmatmul.mubr.msk.f32.gmra.mrb[58].mxu1 %vm1153_vm0, %v938_v59  ;;  %v1097_v59 = vpop.f32.mrb[21].mxu1 }
 0x1d2   :  { %v3196_v61 = vpop.f32.mrb[22].mxu1 }
 0x1d3   :  { %v1100_v0 = vpop.f32.mrb[23].mxu1 }
 0x1d6   :  { %v943_v6 = vpop.f32.mrb[88].mxu0 }
 0x1d7   :  { %v945_v7 = vpop.f32.mrb[89].mxu0  ;;  %2550 = vmatprep.mubr.msk.f32.mxu1 %vm1153_vm0, %v943_v6 }
 0x1d8   :  { %v946_v9 = vpop.f32.mrb[90].mxu0 }
 0x1d9   :  { %v948_v10 = vpop.f32.mrb[91].mxu0  ;;  %2551 = vmatmul.mubr.msk.f32.gmra.mrb[60].mxu1 %vm1153_vm0, %v946_v9 }
 0x1da   :  { %v3200_v10 = vpop.f32.mrb[24].mxu1 }
 0x1db   :  { %v1105_v13 = vpop.f32.mrb[25].mxu1 }
 0x1dc   :  { %v3202_v16 = vpop.f32.mrb[26].mxu1 }
 0x1de   :  { %v951_v17 = vpop.f32.mrb[92].mxu0 }
 0x1df   :  { %v953_v19 = vpop.f32.mrb[93].mxu0  ;;  %2553 = vmatprep.mubr.msk.f32.mxu1 %vm1153_vm0, %v951_v17  ;;  %v1108_v17 = vpop.f32.mrb[27].mxu1 }
 0x1e0   :  { %v954_v20 = vpop.f32.mrb[94].mxu0  ;;  %v3206_v35 = vpop.f32.mrb[28].mxu1 }
 0x1e1   :  { %v956_v24 = vpop.f32.mrb[95].mxu0  ;;  %2554 = vmatmul.mubr.msk.f32.gmra.mrb[62].mxu1 %vm1153_vm0, %v954_v20 }
 0x1e6   :  { %v959_v38 = vpop.f32.mrb[96].mxu0 }
 0x1e7   :  { %v961_v44 = vpop.f32.mrb[97].mxu0  ;;  %2556 = vmatprep.mubr.msk.f32.mxu1 %vm1153_vm0, %v959_v38  ;;  %v1113_v38 = vpop.f32.mrb[29].mxu1 }
 0x1e8   :  { %v962_v50 = vpop.f32.mrb[98].mxu0  ;;  %v3208_v44 = vpop.f32.mrb[30].mxu1 }
 0x1e9   :  { %v964_v53 = vpop.f32.mrb[99].mxu0  ;;  %2557 = vmatmul.mubr.msk.f32.gmra.mrb[64].mxu1 %vm1153_vm0, %v962_v50  ;;  %v1116_v50 = vpop.f32.mrb[31].mxu1 }
 0x1ee   :  { %v967_v4 = vpop.f32.mrb[100].mxu0 }
 0x1ef   :  { %v969_v6 = vpop.f32.mrb[101].mxu0  ;;  %2559 = vmatprep.mubr.msk.f32.mxu1 %vm1153_vm0, %v967_v4 }
 0x1f0   :  { %v970_v7 = vpop.f32.mrb[102].mxu0  ;;  %v3212_v6 = vpop.f32.mrb[32].mxu1 }
 0x1f1   :  { %v972_v9 = vpop.f32.mrb[103].mxu0  ;;  %2560 = vmatmul.mubr.msk.f32.gmra.mrb[66].mxu1 %vm1153_vm0, %v970_v7  ;;  %v1121_v7 = vpop.f32.mrb[33].mxu1 }
 0x1f2   :  { %v3214_v9 = vpop.f32.mrb[34].mxu1 }
 0x1f3   :  { %v1124_v13 = vpop.f32.mrb[35].mxu1 }
 0x1f6   :  { %v975_v19 = vpop.f32.mrb[104].mxu0 }
 0x1f7   :  { %v977_v20 = vpop.f32.mrb[105].mxu0  ;;  %2562 = vmatprep.mubr.msk.f32.mxu1 %vm1153_vm0, %v975_v19 }
 0x1f8   :  { %v978_v24 = vpop.f32.mrb[106].mxu0 }
 0x1f9   :  { %v980_v30 = vpop.f32.mrb[107].mxu0  ;;  %2563 = vmatmul.mubr.msk.f32.gmra.mrb[68].mxu1 %vm1153_vm0, %v978_v24 }
 0x1fa   :  { %v3218_v30 = vpop.f32.mrb[36].mxu1 }
 0x1fb   :  { %3489 = vst [vmem:[#allocation5_spill] sm:$0xff] %v3218_v30  ;;  %v1129_v38 = vpop.f32.mrb[37].mxu1 }
 0x1fc   :  { %v3220_v50 = vpop.f32.mrb[38].mxu1 }
 0x1fd   :  { %3490 = vst [vmem:[#allocation6_spill] sm:$0xff] %v3220_v50 }
 0x1fe   :  { %v983_v53 = vpop.f32.mrb[108].mxu0 }
 0x1ff   :  { %v985_v59 = vpop.f32.mrb[109].mxu0  ;;  %2565 = vmatprep.mubr.msk.f32.mxu1 %vm1153_vm0, %v983_v53  ;;  %v1132_v53 = vpop.f32.mrb[39].mxu1 }
 0x200   :  { %v986_v0 = vpop.f32.mrb[110].mxu0  ;;  %v3224_v13 = vpop.f32.mrb[40].mxu1 }
 0x201   :  { %v988_v4 = vpop.f32.mrb[111].mxu0  ;;  %2566 = vmatmul.mubr.msk.f32.gmra.mrb[70].mxu1 %vm1153_vm0, %v986_v0  ;;  %3491 = vst [vmem:[#allocation7_spill] sm:$0xff] %v3224_v13 }
 0x206   :  { %v991_v17 = vpop.f32.mrb[112].mxu0 }
 0x207   :  { %v993_v19 = vpop.f32.mrb[113].mxu0  ;;  %2568 = vmatprep.mubr.msk.f32.mxu1 %vm1153_vm0, %v991_v17  ;;  %v1137_v17 = vpop.f32.mrb[41].mxu1 }
 0x208   :  { %v994_v20 = vpop.f32.mrb[114].mxu0  ;;  %v3226_v19 = vpop.f32.mrb[42].mxu1 }
 0x209   :  { %v996_v24 = vpop.f32.mrb[115].mxu0  ;;  %2569 = vmatmul.mubr.msk.f32.gmra.mrb[72].mxu1 %vm1153_vm0, %v994_v20  ;;  %v1140_v20 = vpop.f32.mrb[43].mxu1 }
 0x20e   :  { %v999_v59 = vpop.f32.mrb[116].mxu0 }
 0x20f   :  { %v1001_v0 = vpop.f32.mrb[117].mxu0  ;;  %2571 = vmatprep.mubr.msk.f32.mxu1 %vm1153_vm0, %v999_v59 }
 0x210   :  { %v1002_v4 = vpop.f32.mrb[118].mxu0  ;;  %v3230_v0 = vpop.f32.mrb[44].mxu1 }
 0x211   :  { %v1004_v7 = vpop.f32.mrb[119].mxu0  ;;  %2572 = vmatmul.mubr.msk.f32.gmra.mrb[74].mxu1 %vm1153_vm0, %v1002_v4  ;;  %v1145_v59 = vpop.f32.mrb[45].mxu1 }
 0x212   :  { %v3232_v7 = vpop.f32.mrb[46].mxu1 }
 0x213   :  { %v1148_v4 = vpop.f32.mrb[47].mxu1 }
 0x216   :  { %v1007_v24 = vpop.f32.mrb[120].mxu0 }
 0x217   :  { %v1009_v30 = vpop.f32.mrb[121].mxu0  ;;  %2574 = vmatprep.mubr.msk.f32.mxu1 %vm1153_vm0, %v1007_v24 }
 0x218   :  { %v1010_v38 = vpop.f32.mrb[122].mxu0 }
 0x219   :  { %v1012_v53 = vpop.f32.mrb[123].mxu0  ;;  %2575 = vmatmul.mubr.msk.f32.gmra.mrb[76].mxu1 %vm1153_vm0, %v1010_v38 }
 0x21e   :  { %v1015_v50 = vpop.f32.mrb[124].mxu0 }
 0x21f   :  { %v1017_v13 = vpop.f32.mrb[125].mxu0  ;;  %2577 = vmatprep.mubr.msk.f32.mxu1 %vm1153_vm0, %v1015_v50 }
 0x220   :  { %v1018_v17 = vpop.f32.mrb[126].mxu0 }
 0x221   :  { %v1020_v20 = vpop.f32.mrb[127].mxu0  ;;  %2578 = vmatmul.mubr.msk.f32.gmra.mrb[78].mxu1 %vm1153_vm0, %v1018_v17 }
 0x222   :  { %2582 = vmatprep.mubr.msk.f32.mxu1 %vm1153_vm0, %v3083_v33 }
 0x225   :  { %2583 = vmatmul.mubr.msk.f32.vlgmr.msra.gmra.mrb[48].mxu1 %vm1153_vm0, %v3085_v36 }
 0x226   :  { %2631 = vmatpush3.msra.mxu1 %v3154_v1  ;;  %2585 = vmatprep.mubr.msk.f32.mxu1 %vm1153_vm0, %v3087_v39  ;;  %v1023_v30 = vpop.f32.mrb[128].mxu0 }
 0x227   :  { %v1025_v24 = vpop.f32.mrb[129].mxu0 }
 0x228   :  { %v1026_v13 = vpop.f32.mrb[130].mxu0 }
 0x229   :  { %2586 = vmatmul.mubr.msk.f32.gmra.mrb[50].mxu1 %vm1153_vm0, %v3089_v42  ;;  %v1028_v50 = vpop.f32.mrb[131].mxu0 }
 0x22a   :  { %2588 = vmatprep.mubr.msk.f32.mxu1 %vm1153_vm0, %v3091_v45 }
 0x22d   :  { %2589 = vmatmul.mubr.msk.f32.gmra.mrb[52].mxu1 %vm1153_vm0, %v3093_v48 }
 0x22e   :  { %2591 = vmatprep.mubr.msk.f32.mxu1 %vm1153_vm0, %v3095_v51  ;;  %v1031_v33 = vpop.f32.mrb[132].mxu0 }
 0x22f   :  { %v1033_v36 = vpop.f32.mrb[133].mxu0 }
 0x230   :  { %v1034_v1 = vpop.f32.mrb[134].mxu0 }
 0x231   :  { %2592 = vmatmul.mubr.msk.f32.gmra.mrb[54].mxu1 %vm1153_vm0, %v3097_v54  ;;  %v1036_v39 = vpop.f32.mrb[135].mxu0 }
 0x232   :  { %2594 = vmatprep.mubr.msk.f32.mxu1 %vm1153_vm0, %v3099_v57 }
 0x235   :  { %2595 = vmatmul.mubr.msk.f32.gmra.mrb[56].mxu1 %vm1153_vm0, %v3101_v60 }
 0x236   :  { %2597 = vmatprep.mubr.msk.f32.mxu1 %vm1153_vm0, %v3103_v63  ;;  %v1039_v42 = vpop.f32.mrb[136].mxu0 }
 0x237   :  { %v1041_v45 = vpop.f32.mrb[137].mxu0 }
 0x238   :  { %v1042_v48 = vpop.f32.mrb[138].mxu0 }
 0x239   :  { %2598 = vmatmul.mubr.msk.f32.gmra.mrb[58].mxu1 %vm1153_vm0, %v3105_v2  ;;  %v1044_v51 = vpop.f32.mrb[139].mxu0  ;;  %v3492_v2 = vld [vmem:[#allocation5_spill] sm:$0xff] }
 0x23a   :  { %2600 = vmatprep.mubr.msk.f32.mxu1 %vm1153_vm0, %v3107_v5  ;;  %v3493_v5 = vld [vmem:[#allocation6_spill] sm:$0xff] }
 0x23d   :  { %2601 = vmatmul.mubr.msk.f32.gmra.mrb[60].mxu1 %vm1153_vm0, %v3109_v8  ;;  %v3494_v8 = vld [vmem:[#allocation7_spill] sm:$0xff] }
 0x23e   :  { %2603 = vmatprep.mubr.msk.f32.mxu1 %vm1153_vm0, %v3111_v11  ;;  %v1047_v54 = vpop.f32.mrb[140].mxu0 }
 0x23f   :  { %v1049_v57 = vpop.f32.mrb[141].mxu0 }
 0x240   :  { %v1050_v60 = vpop.f32.mrb[142].mxu0 }
 0x241   :  { %2604 = vmatmul.mubr.msk.f32.gmra.mrb[62].mxu1 %vm1153_vm0, %v3113_v14  ;;  %v1052_v63 = vpop.f32.mrb[143].mxu0 }
 0x242   :  { %2606 = vmatprep.mubr.msk.f32.mxu1 %vm1153_vm0, %v3118_v18 }
 0x245   :  { %2607 = vmatmul.mubr.msk.f32.gmra.mrb[64].mxu1 %vm1153_vm0, %v3120_v21 }
 0x246   :  { %2609 = vmatprep.mubr.msk.f32.mxu1 %vm1153_vm0, %v3122_v23 }
 0x249   :  { %2610 = vmatmul.mubr.msk.f32.gmra.mrb[66].mxu1 %vm1153_vm0, %v3124_v25 }
 0x24a   :  { %2612 = vmatprep.mubr.msk.f32.mxu1 %vm1153_vm0, %v3126_v27 }
 0x24d   :  { %2613 = vmatmul.mubr.msk.f32.gmra.mrb[68].mxu1 %vm1153_vm0, %v3128_v29 }
 0x24e   :  { %2615 = vmatprep.mubr.msk.f32.mxu1 %vm1153_vm0, %v3130_v31 }
 0x251   :  { %2616 = vmatmul.mubr.msk.f32.gmra.mrb[70].mxu1 %vm1153_vm0, %v3132_v34 }
 0x252   :  { %2618 = vmatprep.mubr.msk.f32.mxu1 %vm1153_vm0, %v3134_v37 }
 0x255   :  { %2619 = vmatmul.mubr.msk.f32.gmra.mrb[72].mxu1 %vm1153_vm0, %v3136_v40 }
 0x256   :  { %2621 = vmatprep.mubr.msk.f32.mxu1 %vm1153_vm0, %v3138_v43 }
 0x259   :  { %2622 = vmatmul.mubr.msk.f32.gmra.mrb[74].mxu1 %vm1153_vm0, %v3140_v46 }
 0x25a   :  { %2624 = vmatprep.mubr.msk.f32.mxu1 %vm1153_vm0, %v3142_v49 }
 0x25d   :  { %2625 = vmatmul.mubr.msk.f32.gmra.mrb[76].mxu1 %vm1153_vm0, %v3144_v52 }
 0x25e   :  { %2627 = vmatprep.mubr.msk.f32.mxu1 %vm1153_vm0, %v3146_v55 }
 0x261   :  { %2628 = vmatmul.mubr.msk.f32.gmra.mrb[78].mxu1 %vm1153_vm0, %v3148_v58 }
 0x262   :  { %2632 = vmatprep.mubr.msk.f32.mxu1 %vm1153_vm0, %v1023_v30 }
 0x265   :  { %2633 = vmatmul.mubr.msk.f32.vlgmr.msra.gmra.mrb[48].mxu1 %vm1153_vm0, %v1026_v13 }
 0x266   :  { %2635 = vmatprep.mubr.msk.f32.mxu1 %vm1153_vm0, %v1031_v33 }
 0x269   :  { %2636 = vmatmul.mubr.msk.f32.gmra.mrb[50].mxu1 %vm1153_vm0, %v1034_v1 }
 0x26a   :  { %2638 = vmatprep.mubr.msk.f32.mxu1 %vm1153_vm0, %v1039_v42 }
 0x26d   :  { %2639 = vmatmul.mubr.msk.f32.gmra.mrb[52].mxu1 %vm1153_vm0, %v1042_v48 }
 0x26e   :  { %2641 = vmatprep.mubr.msk.f32.mxu1 %vm1153_vm0, %v1047_v54 }
 0x271   :  { %2642 = vmatmul.mubr.msk.f32.gmra.mrb[54].mxu1 %vm1153_vm0, %v1050_v60 }
 0x272   :  { %2644 = vmatprep.mubr.msk.f32.mxu1 %vm1153_vm0, %v3164_v22 }
 0x275   :  { %2645 = vmatmul.mubr.msk.f32.gmra.mrb[56].mxu1 %vm1153_vm0, %v3166_v26 }
 0x276   :  { %2647 = vmatprep.mubr.msk.f32.mxu1 %vm1153_vm0, %v3170_v41 }
 0x279   :  { %2648 = vmatmul.mubr.msk.f32.gmra.mrb[58].mxu1 %vm1153_vm0, %v3172_v47 }
 0x27a   :  { %2650 = vmatprep.mubr.msk.f32.mxu1 %vm1153_vm0, %v3176_v62 }
 0x27d   :  { %2651 = vmatmul.mubr.msk.f32.gmra.mrb[60].mxu1 %vm1153_vm0, %v3178_v3 }
 0x27e   :  { %2653 = vmatprep.mubr.msk.f32.mxu1 %vm1153_vm0, %v3182_v12 }
 0x281   :  { %2654 = vmatmul.mubr.msk.f32.gmra.mrb[62].mxu1 %vm1153_vm0, %v3184_v15 }
 0x282   :  { %2656 = vmatprep.mubr.msk.f32.mxu1 %vm1153_vm0, %v3188_v28 }
 0x285   :  { %2657 = vmatmul.mubr.msk.f32.gmra.mrb[64].mxu1 %vm1153_vm0, %v3190_v32 }
 0x286   :  { %2659 = vmatprep.mubr.msk.f32.mxu1 %vm1153_vm0, %v3194_v56 }
 0x289   :  { %2660 = vmatmul.mubr.msk.f32.gmra.mrb[66].mxu1 %vm1153_vm0, %v3196_v61 }
 0x28a   :  { %2662 = vmatprep.mubr.msk.f32.mxu1 %vm1153_vm0, %v3200_v10 }
 0x28d   :  { %2663 = vmatmul.mubr.msk.f32.gmra.mrb[68].mxu1 %vm1153_vm0, %v3202_v16 }
 0x28e   :  { %2665 = vmatprep.mubr.msk.f32.mxu1 %vm1153_vm0, %v3206_v35 }
 0x291   :  { %2666 = vmatmul.mubr.msk.f32.gmra.mrb[70].mxu1 %vm1153_vm0, %v3208_v44 }
 0x292   :  { %2668 = vmatprep.mubr.msk.f32.mxu1 %vm1153_vm0, %v3212_v6 }
 0x295   :  { %2669 = vmatmul.mubr.msk.f32.gmra.mrb[72].mxu1 %vm1153_vm0, %v3214_v9 }
 0x296   :  { %2671 = vmatprep.mubr.msk.f32.mxu1 %vm1153_vm0, %v3492_v2 }
 0x299   :  { %2672 = vmatmul.mubr.msk.f32.gmra.mrb[74].mxu1 %vm1153_vm0, %v3493_v5 }
 0x29a   :  { %2674 = vmatprep.mubr.msk.f32.mxu1 %vm1153_vm0, %v3494_v8 }
 0x29d   :  { %2675 = vmatmul.mubr.msk.f32.gmra.mrb[76].mxu1 %vm1153_vm0, %v3226_v19 }
 0x29e   :  { %2677 = vmatprep.mubr.msk.f32.mxu1 %vm1153_vm0, %v3230_v0 }
 0x2a1   :  { %2678 = vmatmul.mubr.msk.f32.gmra.mrb[78].mxu1 %vm1153_vm0, %v3232_v7 }
 0x338   :  { %v2634_v11 = vpop.f32.mrb[48].mxu1 }
 0x339   :  { %v2152_v14 = vmax.f32 %v2634_v11, 0.0  ;;  %v1960_v18 = vpop.f32.mrb[49].mxu1 }
 0x33a   :  { %v2151_v21 = vmax.f32 %v1960_v18, 0.0 }
 0x33b   :  { %2185 = vst.msk [vmem:[%s3488_s3 + $0x8] sm:$0xff] %vm2183_vm1, %v2152_v14 }
 0x33c   :  { %2184 = vst.msk [vmem:[%s3488_s3] sm:$0xff] %vm2183_vm1, %v2151_v21  ;;  %v2637_v23 = vpop.f32.mrb[50].mxu1 }
 0x33d   :  { %v2154_v25 = vmax.f32 %v2637_v23, 0.0  ;;  %v1970_v27 = vpop.f32.mrb[51].mxu1 }
 0x33e   :  { %v2153_v29 = vmax.f32 %v1970_v27, 0.0 }
 0x33f   :  { %2187 = vst.msk [vmem:[%s3488_s3 + $0x18] sm:$0xff] %vm2183_vm1, %v2154_v25 }
 0x340   :  { %2186 = vst.msk [vmem:[%s3488_s3 + $0x10] sm:$0xff] %vm2183_vm1, %v2153_v29  ;;  %v2640_v31 = vpop.f32.mrb[52].mxu1 }
 0x341   :  { %v2156_v34 = vmax.f32 %v2640_v31, 0.0  ;;  %v1980_v37 = vpop.f32.mrb[53].mxu1 }
 0x342   :  { %v2155_v40 = vmax.f32 %v1980_v37, 0.0 }
 0x343   :  { %2189 = vst.msk [vmem:[%s3488_s3 + $0x28] sm:$0xff] %vm2183_vm1, %v2156_v34 }
 0x344   :  { %2188 = vst.msk [vmem:[%s3488_s3 + $0x20] sm:$0xff] %vm2183_vm1, %v2155_v40  ;;  %v2643_v43 = vpop.f32.mrb[54].mxu1 }
 0x345   :  { %v2158_v46 = vmax.f32 %v2643_v43, 0.0  ;;  %v1990_v49 = vpop.f32.mrb[55].mxu1 }
 0x346   :  { %v2157_v52 = vmax.f32 %v1990_v49, 0.0 }
 0x347   :  { %2191 = vst.msk [vmem:[%s3488_s3 + $0x38] sm:$0xff] %vm2183_vm1, %v2158_v46 }
 0x348   :  { %2190 = vst.msk [vmem:[%s3488_s3 + $0x30] sm:$0xff] %vm2183_vm1, %v2157_v52  ;;  %v2646_v55 = vpop.f32.mrb[56].mxu1 }
 0x349   :  { %v2160_v58 = vmax.f32 %v2646_v55, 0.0  ;;  %v2000_v22 = vpop.f32.mrb[57].mxu1 }
 0x34a   :  { %v2159_v26 = vmax.f32 %v2000_v22, 0.0 }
 0x34b   :  { %2193 = vst.msk [vmem:[%s3488_s3 + $0x48] sm:$0xff] %vm2183_vm1, %v2160_v58 }
 0x34c   :  { %2192 = vst.msk [vmem:[%s3488_s3 + $0x40] sm:$0xff] %vm2183_vm1, %v2159_v26  ;;  %v2649_v41 = vpop.f32.mrb[58].mxu1 }
 0x34d   :  { %v2162_v47 = vmax.f32 %v2649_v41, 0.0  ;;  %v2010_v62 = vpop.f32.mrb[59].mxu1 }
 0x34e   :  { %v2161_v3 = vmax.f32 %v2010_v62, 0.0 }
 0x34f   :  { %2195 = vst.msk [vmem:[%s3488_s3 + $0x58] sm:$0xff] %vm2183_vm1, %v2162_v47 }
 0x350   :  { %2194 = vst.msk [vmem:[%s3488_s3 + $0x50] sm:$0xff] %vm2183_vm1, %v2161_v3  ;;  %v2652_v12 = vpop.f32.mrb[60].mxu1 }
 0x351   :  { %v2164_v15 = vmax.f32 %v2652_v12, 0.0  ;;  %v2020_v28 = vpop.f32.mrb[61].mxu1 }
 0x352   :  { %v2163_v32 = vmax.f32 %v2020_v28, 0.0 }
 0x353   :  { %2197 = vst.msk [vmem:[%s3488_s3 + $0x68] sm:$0xff] %vm2183_vm1, %v2164_v15 }
 0x354   :  { %2196 = vst.msk [vmem:[%s3488_s3 + $0x60] sm:$0xff] %vm2183_vm1, %v2163_v32  ;;  %v2655_v56 = vpop.f32.mrb[62].mxu1 }
 0x355   :  { %v2166_v61 = vmax.f32 %v2655_v56, 0.0  ;;  %v2030_v10 = vpop.f32.mrb[63].mxu1 }
 0x356   :  { %v2165_v16 = vmax.f32 %v2030_v10, 0.0 }
 0x357   :  { %2199 = vst.msk [vmem:[%s3488_s3 + $0x78] sm:$0xff] %vm2183_vm1, %v2166_v61 }
 0x358   :  { %2198 = vst.msk [vmem:[%s3488_s3 + $0x70] sm:$0xff] %vm2183_vm1, %v2165_v16  ;;  %v2658_v35 = vpop.f32.mrb[64].mxu1 }
 0x359   :  { %v2168_v44 = vmax.f32 %v2658_v35, 0.0  ;;  %v2040_v6 = vpop.f32.mrb[65].mxu1 }
 0x35a   :  { %v2167_v9 = vmax.f32 %v2040_v6, 0.0 }
 0x35b   :  { %2201 = vst.msk [vmem:[%s3488_s3 + $0x88] sm:$0xff] %vm2183_vm1, %v2168_v44 }
 0x35c   :  { %2200 = vst.msk [vmem:[%s3488_s3 + $0x80] sm:$0xff] %vm2183_vm1, %v2167_v9  ;;  %v2661_v19 = vpop.f32.mrb[66].mxu1 }
 0x35d   :  { %v2170_v38 = vmax.f32 %v2661_v19, 0.0  ;;  %v2050_v53 = vpop.f32.mrb[67].mxu1 }
 0x35e   :  { %v2169_v0 = vmax.f32 %v2050_v53, 0.0 }
 0x35f   :  { %2203 = vst.msk [vmem:[%s3488_s3 + $0x98] sm:$0xff] %vm2183_vm1, %v2170_v38 }
 0x360   :  { %2202 = vst.msk [vmem:[%s3488_s3 + $0x90] sm:$0xff] %vm2183_vm1, %v2169_v0  ;;  %v2664_v59 = vpop.f32.mrb[68].mxu1 }
 0x361   :  { %v2172_v7 = vmax.f32 %v2664_v59, 0.0  ;;  %v2060_v4 = vpop.f32.mrb[69].mxu1 }
 0x362   :  { %v2171_v17 = vmax.f32 %v2060_v4, 0.0 }
 0x363   :  { %2205 = vst.msk [vmem:[%s3488_s3 + $0xa8] sm:$0xff] %vm2183_vm1, %v2172_v7 }
 0x364   :  { %2204 = vst.msk [vmem:[%s3488_s3 + $0xa0] sm:$0xff] %vm2183_vm1, %v2171_v17  ;;  %v2667_v20 = vpop.f32.mrb[70].mxu1 }
 0x365   :  { %v2174_v30 = vmax.f32 %v2667_v20, 0.0  ;;  %v2070_v24 = vpop.f32.mrb[71].mxu1 }
 0x366   :  { %v2173_v13 = vmax.f32 %v2070_v24, 0.0 }
 0x367   :  { %2207 = vst.msk [vmem:[%s3488_s3 + $0xb8] sm:$0xff] %vm2183_vm1, %v2174_v30 }
 0x368   :  { %2206 = vst.msk [vmem:[%s3488_s3 + $0xb0] sm:$0xff] %vm2183_vm1, %v2173_v13  ;;  %v2670_v50 = vpop.f32.mrb[72].mxu1 }
 0x369   :  { %v2176_v33 = vmax.f32 %v2670_v50, 0.0  ;;  %v2080_v36 = vpop.f32.mrb[73].mxu1 }
 0x36a   :  { %v2175_v1 = vmax.f32 %v2080_v36, 0.0 }
 0x36b   :  { %2209 = vst.msk [vmem:[%s3488_s3 + $0xc8] sm:$0xff] %vm2183_vm1, %v2176_v33 }
 0x36c   :  { %2208 = vst.msk [vmem:[%s3488_s3 + $0xc0] sm:$0xff] %vm2183_vm1, %v2175_v1  ;;  %v2673_v39 = vpop.f32.mrb[74].mxu1 }
 0x36d   :  { %v2178_v42 = vmax.f32 %v2673_v39, 0.0  ;;  %v2090_v45 = vpop.f32.mrb[75].mxu1 }
 0x36e   :  { %v2177_v48 = vmax.f32 %v2090_v45, 0.0 }
 0x36f   :  { %2211 = vst.msk [vmem:[%s3488_s3 + $0xd8] sm:$0xff] %vm2183_vm1, %v2178_v42 }
 0x370   :  { %2210 = vst.msk [vmem:[%s3488_s3 + $0xd0] sm:$0xff] %vm2183_vm1, %v2177_v48  ;;  %v2676_v51 = vpop.f32.mrb[76].mxu1 }
 0x371   :  { %v2180_v54 = vmax.f32 %v2676_v51, 0.0  ;;  %v2100_v57 = vpop.f32.mrb[77].mxu1 }
 0x372   :  { %v2179_v60 = vmax.f32 %v2100_v57, 0.0 }
 0x373   :  { %2213 = vst.msk [vmem:[%s3488_s3 + $0xe8] sm:$0xff] %vm2183_vm1, %v2180_v54 }
 0x374   :  { %2212 = vst.msk [vmem:[%s3488_s3 + $0xe0] sm:$0xff] %vm2183_vm1, %v2179_v60  ;;  %v2679_v63 = vpop.f32.mrb[78].mxu1 }
 0x375   :  { %v2182_v2 = vmax.f32 %v2679_v63, 0.0  ;;  %v2110_v5 = vpop.f32.mrb[79].mxu1 }
 0x376   :  { %v2181_v8 = vmax.f32 %v2110_v5, 0.0 }
 0x377   :  { %2215 = vst.msk [vmem:[%s3488_s3 + $0xf8] sm:$0xff] %vm2183_vm1, %v2182_v2 }
 0x378   :  { %2214 = vst.msk [vmem:[%s3488_s3 + $0xf0] sm:$0xff] %vm2183_vm1, %v2181_v8 }
 0x379   :  { %2220 = vsyncpa [#allocation3], 1 }

// kernel: tpu_custom_call.1
= control target key start
LH: loop header
LB: loop body
LE: loop exit
PB: predicated region body
PF: predicated region fallthrough
CT: control target
= control target key end

     0   :  { %8 = vsyncpa [#allocation3], 0  ;;  %s2964_s12 = smov [#allocation2]   ;;  %s3485_s0 = inlined_call_operand.vmem [shape: bf16[256,8], index: 0, kind: input, shape index: {}]   ;;  %s3486_s1 = inlined_call_operand.hbm [shape: bf16[3,256,256], index: 1, kind: input, shape index: {}]   ;;  %s3487_s2 = inlined_call_operand.vmem [shape: f32[3,8,16], index: 2, kind: input, shape index: {}]   ;;  %s3488_s3 = inlined_call_operand.vmem [shape: f32[256,16], index: 3, kind: output, shape index: {}]  }
   0x1   :  { %s16_s13 = sshll.u32 %s2964_s12, 4  ;;  %s2940_s16 = scalar_lea.hbm %s3486_s1, 12288  ;;  %s17_s13 = int_to_ptr.vmem [resolvable:$true] %s16_s13 }
   0x2   :  { %p2941_p0 = scmp.ne.s32.totalorder %s3486_s1, %s2940_s16  ;;  %p2944_p1 = scmp.lt.u32.totalorder %s2940_s16, %s3486_s1 }
   0x4   :  { %p2946_p2 = pnand %p2944_p1, %p2941_p0 }
   0x6   :  { %2949 = shalt.err (!%p2946_p2)
}
   0x7   :  { %s2950_s21 = scalar_lea.vmem %s17_s13, 12288  ;;  %p2955_p4 = scmp.lt.s32.totalorder %s17_s13, %s17_s13 }
   0x8   :  { %p2951_p3 = scmp.ne.s32.totalorder %s17_s13, %s2950_s21  ;;  %p2956_p5 = scmp.lt.s32.totalorder %s2950_s21, %s2950_s21 }
   0xa   :  { %p2957_p6 = por %p2956_p5, %p2955_p4 }
   0xc   :  { %p2958_p7 = pnand %p2957_p6, %p2951_p3 }
   0xe   :  { %2961 = shalt.err (!%p2958_p7)
}
   0xf   :  { %s2965_s22 = smov 128   ;;  %s2966_s23 = smov 8  }
  0x10   :  { %22 = dma.hbm_to_vmem [thread:$0]  %s3486_s1, 12288, %s17_s13, [#allocation3], %s2965_s22, %s2965_s22, %s2966_s23  }
  0x11   :  { %2962 = dma.done.wait [#allocation3], 12288  }
  0x12   :  { %2963 = vsyncadd [#allocation3], 4294955008  ;;  %v2967_v0 = vmov 0   ;;  %v2780_v1 = vld [vmem:[%s3485_s0] sm:$0xff]   ;;  %v2781_v2 = vld [vmem:[%s3485_s0 + $0x8] sm:$0xff]   ;;  %vm1153_vm0 = vcmask 64512  }
  0x13   :  { %733 = vmatprep.subr.bf16.mxu0 %v2967_v0  ;;  %2680 = vmatprep.subr.bf16.mxu1 %v2967_v0  ;;  %v2782_v3 = vld [vmem:[%s3485_s0 + $0x10] sm:$0xff]   ;;  %v2783_v4 = vld [vmem:[%s3485_s0 + $0x18] sm:$0xff]   ;;  %v2784_v5 = vld [vmem:[%s3485_s0 + $0x20] sm:$0xff]   ;;  %vm2183_vm1 = vcmask 130048  }
  0x14   :  { %734 = vmatpush1.bf16.msra.mxu0 %v2780_v1  ;;  %2696 = vmatpush1.bf16.msra.mxu1 %v2780_v1  ;;  %v2798_v6 = vld [vmem:[#allocation2 + $0x4] ss:$8 sps:$4 sm:$0xff]   ;;  %v2786_v8 = vld [vmem:[%s3485_s0 + $0x30] sm:$0xff]   ;;  %v2787_v9 = vld [vmem:[%s3485_s0 + $0x38] sm:$0xff]  }
  0x15   :  { %735 = vmatprep.subr.bf16.mxu0 %v2967_v0  ;;  %2681 = vmatprep.subr.bf16.mxu1 %v2967_v0  ;;  %v2785_v7 = vld [vmem:[%s3485_s0 + $0x28] sm:$0xff]   ;;  %v2788_v10 = vld [vmem:[%s3485_s0 + $0x40] sm:$0xff]   ;;  %v2790_v12 = vld [vmem:[%s3485_s0 + $0x50] sm:$0xff]  }
  0x16   :  { %765 = vmatprep.mubr.bf16.mxu0 %v2798_v6  ;;  %v2789_v11 = vld [vmem:[%s3485_s0 + $0x48] sm:$0xff]   ;;  %v2791_v13 = vld [vmem:[%s3485_s0 + $0x58] sm:$0xff]   ;;  %v2792_v14 = vld [vmem:[%s3485_s0 + $0x60] sm:$0xff]  }
  0x17   :  { %v2793_v15 = vld [vmem:[%s3485_s0 + $0x68] sm:$0xff]   ;;  %v2794_v16 = vld [vmem:[%s3485_s0 + $0x70] sm:$0xff]   ;;  %v2795_v17 = vld [vmem:[%s3485_s0 + $0x78] sm:$0xff]  }
  0x18   :  { %736 = vmatpush1.bf16.msra.mxu0 %v2781_v2  ;;  %2697 = vmatpush1.bf16.msra.mxu1 %v2781_v2  ;;  %v2796_v18 = vld [vmem:[#allocation2] ss:$8 sps:$4 sm:$0xff]   ;;  %v2799_v19 = vld [vmem:[#allocation2 + $0x14] ss:$8 sps:$4 sm:$0xff]   ;;  %v2801_v20 = vld [vmem:[#allocation2 + $0x10] ss:$8 sps:$4 sm:$0xff]  }
  0x19   :  { %737 = vmatprep.subr.bf16.mxu0 %v2967_v0  ;;  %2682 = vmatprep.subr.bf16.mxu1 %v2967_v0  ;;  %v2802_v21 = vld [vmem:[#allocation2 + $0x24] ss:$8 sps:$4 sm:$0xff]   ;;  %v2804_v22 = vld [vmem:[#allocation2 + $0x20] ss:$8 sps:$4 sm:$0xff]   ;;  %v2805_v23 = vld [vmem:[#allocation2 + $0x34] ss:$8 sps:$4 sm:$0xff]  }
  0x1a   :  { %v2807_v24 = vld [vmem:[#allocation2 + $0x30] ss:$8 sps:$4 sm:$0xff]   ;;  %v2808_v25 = vld [vmem:[#allocation2 + $0x44] ss:$8 sps:$4 sm:$0xff]   ;;  %v2810_v26 = vld [vmem:[#allocation2 + $0x40] ss:$8 sps:$4 sm:$0xff]  }
  0x1b   :  { %v2811_v27 = vld [vmem:[#allocation2 + $0x54] ss:$8 sps:$4 sm:$0xff]   ;;  %v2813_v28 = vld [vmem:[#allocation2 + $0x50] ss:$8 sps:$4 sm:$0xff]   ;;  %v2814_v29 = vld [vmem:[#allocation2 + $0x64] ss:$8 sps:$4 sm:$0xff]  }
  0x1c   :  { %738 = vmatpush1.bf16.msra.mxu0 %v2782_v3  ;;  %2698 = vmatpush1.bf16.msra.mxu1 %v2782_v3  ;;  %v2816_v30 = vld [vmem:[#allocation2 + $0x60] ss:$8 sps:$4 sm:$0xff]   ;;  %v2817_v31 = vld [vmem:[#allocation2 + $0x74] ss:$8 sps:$4 sm:$0xff]   ;;  %v2819_v32 = vld [vmem:[#allocation2 + $0x70] ss:$8 sps:$4 sm:$0xff]  }
  0x1d   :  { %739 = vmatprep.subr.bf16.mxu0 %v2967_v0  ;;  %2683 = vmatprep.subr.bf16.mxu1 %v2967_v0  ;;  %v2820_v33 = vld [vmem:[#allocation2 + $0x84] ss:$8 sps:$4 sm:$0xff]   ;;  %v2822_v34 = vld [vmem:[#allocation2 + $0x80] ss:$8 sps:$4 sm:$0xff]   ;;  %v2823_v35 = vld [vmem:[#allocation2 + $0x94] ss:$8 sps:$4 sm:$0xff]  }
  0x1e   :  { %v2825_v36 = vld [vmem:[#allocation2 + $0x90] ss:$8 sps:$4 sm:$0xff]   ;;  %v2826_v37 = vld [vmem:[#allocation2 + $0xa4] ss:$8 sps:$4 sm:$0xff]   ;;  %v2828_v38 = vld [vmem:[#allocation2 + $0xa0] ss:$8 sps:$4 sm:$0xff]  }
  0x1f   :  { %v2829_v39 = vld [vmem:[#allocation2 + $0xb4] ss:$8 sps:$4 sm:$0xff]   ;;  %v2831_v40 = vld [vmem:[#allocation2 + $0xb0] ss:$8 sps:$4 sm:$0xff]   ;;  %v2832_v41 = vld [vmem:[#allocation2 + $0xc4] ss:$8 sps:$4 sm:$0xff]  }
  0x20   :  { %740 = vmatpush1.bf16.msra.mxu0 %v2783_v4  ;;  %2699 = vmatpush1.bf16.msra.mxu1 %v2783_v4  ;;  %v2834_v42 = vld [vmem:[#allocation2 + $0xc0] ss:$8 sps:$4 sm:$0xff]   ;;  %v2835_v43 = vld [vmem:[#allocation2 + $0xd4] ss:$8 sps:$4 sm:$0xff]   ;;  %v2837_v44 = vld [vmem:[#allocation2 + $0xd0] ss:$8 sps:$4 sm:$0xff]  }
  0x21   :  { %741 = vmatprep.subr.bf16.mxu0 %v2967_v0  ;;  %2684 = vmatprep.subr.bf16.mxu1 %v2967_v0  ;;  %v2838_v45 = vld [vmem:[#allocation2 + $0xe4] ss:$8 sps:$4 sm:$0xff]   ;;  %v2840_v46 = vld [vmem:[#allocation2 + $0xe0] ss:$8 sps:$4 sm:$0xff]   ;;  %v2841_v47 = vld [vmem:[#allocation2 + $0xf4] ss:$8 sps:$4 sm:$0xff]  }
  0x22   :  { %v2891_v48 = vld [vmem:[#allocation2 + $0x244] ss:$8 sps:$4 sm:$0xff]   ;;  %v2843_v49 = vld [vmem:[#allocation2 + $0xf0] ss:$8 sps:$4 sm:$0xff]   ;;  %v2889_v50 = vld [vmem:[#allocation2 + $0x240] ss:$8 sps:$4 sm:$0xff]  }
  0x23   :  { %v2844_v51 = vld [vmem:[#allocation2 + $0x104] ss:$8 sps:$4 sm:$0xff]   ;;  %1053 = vmatprep.mubr.bf16.mxu1 %v2891_v48  ;;  %v2895_v52 = vld [vmem:[#allocation2 + $0x254] ss:$8 sps:$4 sm:$0xff]   ;;  %v2846_v53 = vld [vmem:[#allocation2 + $0x100] ss:$8 sps:$4 sm:$0xff]  }
  0x24   :  { %742 = vmatpush1.bf16.msra.mxu0 %v2784_v5  ;;  %2700 = vmatpush1.bf16.msra.mxu1 %v2784_v5  ;;  %v2897_v54 = vld [vmem:[#allocation2 + $0x250] ss:$8 sps:$4 sm:$0xff]   ;;  %v2847_v55 = vld [vmem:[#allocation2 + $0x114] ss:$8 sps:$4 sm:$0xff]   ;;  %v2898_v56 = vld [vmem:[#allocation2 + $0x264] ss:$8 sps:$4 sm:$0xff]  }
  0x25   :  { %743 = vmatprep.subr.bf16.mxu0 %v2967_v0  ;;  %2685 = vmatprep.subr.bf16.mxu1 %v2967_v0  ;;  %v2849_v57 = vld [vmem:[#allocation2 + $0x110] ss:$8 sps:$4 sm:$0xff]   ;;  %v2900_v58 = vld [vmem:[#allocation2 + $0x260] ss:$8 sps:$4 sm:$0xff]   ;;  %v2850_v59 = vld [vmem:[#allocation2 + $0x124] ss:$8 sps:$4 sm:$0xff]  }
  0x26   :  { %v2901_v60 = vld [vmem:[#allocation2 + $0x274] ss:$8 sps:$4 sm:$0xff]   ;;  %v2852_v61 = vld [vmem:[#allocation2 + $0x120] ss:$8 sps:$4 sm:$0xff]   ;;  %v2903_v62 = vld [vmem:[#allocation2 + $0x270] ss:$8 sps:$4 sm:$0xff]  }
  0x27   :  { %v2853_v63 = vld [vmem:[#allocation2 + $0x134] ss:$8 sps:$4 sm:$0xff]   ;;  %v2855_v1 = vld [vmem:[#allocation2 + $0x130] ss:$8 sps:$4 sm:$0xff]   ;;  %v2906_v2 = vld [vmem:[#allocation2 + $0x280] ss:$8 sps:$4 sm:$0xff]  }
  0x28   :  { %744 = vmatpush1.bf16.msra.mxu0 %v2785_v7  ;;  %2701 = vmatpush1.bf16.msra.mxu1 %v2785_v7  ;;  %v2856_v3 = vld [vmem:[#allocation2 + $0x144] ss:$8 sps:$4 sm:$0xff]   ;;  %v2907_v4 = vld [vmem:[#allocation2 + $0x294] ss:$8 sps:$4 sm:$0xff]   ;;  %v2858_v5 = vld [vmem:[#allocation2 + $0x140] ss:$8 sps:$4 sm:$0xff]  }
  0x29   :  { %745 = vmatprep.subr.bf16.mxu0 %v2967_v0  ;;  %2686 = vmatprep.subr.bf16.mxu1 %v2967_v0  ;;  %v2909_v6 = vld [vmem:[#allocation2 + $0x290] ss:$8 sps:$4 sm:$0xff]   ;;  %v2859_v7 = vld [vmem:[#allocation2 + $0x154] ss:$8 sps:$4 sm:$0xff]  }
  0x2c   :  { %746 = vmatpush1.bf16.msra.mxu0 %v2786_v8  ;;  %2702 = vmatpush1.bf16.msra.mxu1 %v2786_v8  ;;  %v2910_v8 = vld [vmem:[#allocation2 + $0x2a4] ss:$8 sps:$4 sm:$0xff]  }
  0x2d   :  { %747 = vmatprep.subr.bf16.mxu0 %v2967_v0  ;;  %2687 = vmatprep.subr.bf16.mxu1 %v2967_v0 }
  0x30   :  { %748 = vmatpush1.bf16.msra.mxu0 %v2787_v9  ;;  %2703 = vmatpush1.bf16.msra.mxu1 %v2787_v9  ;;  %v2861_v9 = vld [vmem:[#allocation2 + $0x150] ss:$8 sps:$4 sm:$0xff]  }
  0x31   :  { %749 = vmatprep.subr.bf16.mxu0 %v2967_v0  ;;  %2688 = vmatprep.subr.bf16.mxu1 %v2967_v0 }
  0x34   :  { %750 = vmatpush1.bf16.msra.mxu0 %v2788_v10  ;;  %2704 = vmatpush1.bf16.msra.mxu1 %v2788_v10  ;;  %v2912_v10 = vld [vmem:[#allocation2 + $0x2a0] ss:$8 sps:$4 sm:$0xff]  }
  0x35   :  { %751 = vmatprep.subr.bf16.mxu0 %v2967_v0  ;;  %2689 = vmatprep.subr.bf16.mxu1 %v2967_v0 }
  0x38   :  { %752 = vmatpush1.bf16.msra.mxu0 %v2789_v11  ;;  %2705 = vmatpush1.bf16.msra.mxu1 %v2789_v11  ;;  %v2862_v11 = vld [vmem:[#allocation2 + $0x164] ss:$8 sps:$4 sm:$0xff]  }
  0x39   :  { %753 = vmatprep.subr.bf16.mxu0 %v2967_v0  ;;  %2690 = vmatprep.subr.bf16.mxu1 %v2967_v0 }
  0x3c   :  { %754 = vmatpush1.bf16.msra.mxu0 %v2790_v12  ;;  %2706 = vmatpush1.bf16.msra.mxu1 %v2790_v12  ;;  %v2916_v12 = vld [vmem:[#allocation2 + $0x2b4] ss:$8 sps:$4 sm:$0xff]  }
  0x3d   :  { %755 = vmatprep.subr.bf16.mxu0 %v2967_v0  ;;  %2691 = vmatprep.subr.bf16.mxu1 %v2967_v0 }
  0x40   :  { %756 = vmatpush1.bf16.msra.mxu0 %v2791_v13  ;;  %2707 = vmatpush1.bf16.msra.mxu1 %v2791_v13  ;;  %v2864_v13 = vld [vmem:[#allocation2 + $0x160] ss:$8 sps:$4 sm:$0xff]  }
  0x41   :  { %757 = vmatprep.subr.bf16.mxu0 %v2967_v0  ;;  %2692 = vmatprep.subr.bf16.mxu1 %v2967_v0 }
  0x44   :  { %758 = vmatpush1.bf16.msra.mxu0 %v2792_v14  ;;  %2708 = vmatpush1.bf16.msra.mxu1 %v2792_v14  ;;  %v2918_v14 = vld [vmem:[#allocation2 + $0x2b0] ss:$8 sps:$4 sm:$0xff]  }
  0x45   :  { %759 = vmatprep.subr.bf16.mxu0 %v2967_v0  ;;  %2693 = vmatprep.subr.bf16.mxu1 %v2967_v0 }
  0x48   :  { %760 = vmatpush1.bf16.msra.mxu0 %v2793_v15  ;;  %2709 = vmatpush1.bf16.msra.mxu1 %v2793_v15  ;;  %v2865_v15 = vld [vmem:[#allocation2 + $0x174] ss:$8 sps:$4 sm:$0xff]  }
  0x49   :  { %761 = vmatprep.subr.bf16.mxu0 %v2967_v0  ;;  %2694 = vmatprep.subr.bf16.mxu1 %v2967_v0 }
  0x4c   :  { %762 = vmatpush1.bf16.msra.mxu0 %v2794_v16  ;;  %2710 = vmatpush1.bf16.msra.mxu1 %v2794_v16  ;;  %v2333_v16 = vld [vmem:[%s3487_s2 + $0x8] sm:$0xff] }
  0x4d   :  { %763 = vmatprep.subr.bf16.mxu0 %v2967_v0  ;;  %2695 = vmatprep.subr.bf16.mxu1 %v2967_v0  ;;  %v2904_v0 = vld [vmem:[#allocation2 + $0x284] ss:$8 sps:$4 sm:$0xff]  }
  0x50   :  { %764 = vmatpush1.bf16.msra.mxu0 %v2795_v17  ;;  %2711 = vmatpush1.bf16.msra.mxu1 %v2795_v17  ;;  %v2922_v17 = vld [vmem:[#allocation2 + $0x2c4] ss:$8 sps:$4 sm:$0xff]  }
  0x51   :  { %2530 = vmatprep.subr.mxu1 %v2333_v16 }
  0x53   :  { %766 = vmatmul.mubr.bf16.vlgmr.msra.gmra.mrb[0].mxu0 %v2796_v18  ;;  %1054 = vmatmul.mubr.bf16.vlgmr.msra.gmra.mrb[0].mxu1 %v2889_v50  ;;  %v2867_v18 = vld [vmem:[#allocation2 + $0x170] ss:$8 sps:$4 sm:$0xff]  }
  0x54   :  { %773 = vmatprep.mubr.bf16.mxu0 %v2799_v19  ;;  %1061 = vmatprep.mubr.bf16.mxu1 %v2895_v52  ;;  %v2924_v19 = vld [vmem:[#allocation2 + $0x2c0] ss:$8 sps:$4 sm:$0xff]  }
  0x55   :  { %2531 = vmatpush3.msra.mxu1 %v2333_v16 }
  0x5b   :  { %774 = vmatmul.mubr.bf16.gmra.mrb[4].mxu0 %v2801_v20  ;;  %1062 = vmatmul.mubr.bf16.gmra.mrb[4].mxu1 %v2897_v54  ;;  %v2868_v20 = vld [vmem:[#allocation2 + $0x184] ss:$8 sps:$4 sm:$0xff]  }
  0x5c   :  { %781 = vmatprep.mubr.bf16.mxu0 %v2802_v21  ;;  %1069 = vmatprep.mubr.bf16.mxu1 %v2898_v56  ;;  %v2928_v21 = vld [vmem:[#allocation2 + $0x2d4] ss:$8 sps:$4 sm:$0xff]  }
  0x63   :  { %782 = vmatmul.mubr.bf16.gmra.mrb[8].mxu0 %v2804_v22  ;;  %1070 = vmatmul.mubr.bf16.gmra.mrb[8].mxu1 %v2900_v58  ;;  %v2870_v22 = vld [vmem:[#allocation2 + $0x180] ss:$8 sps:$4 sm:$0xff]  }
  0x64   :  { %789 = vmatprep.mubr.bf16.mxu0 %v2805_v23  ;;  %1077 = vmatprep.mubr.bf16.mxu1 %v2901_v60  ;;  %v2930_v23 = vld [vmem:[#allocation2 + $0x2d0] ss:$8 sps:$4 sm:$0xff]  }
  0x6b   :  { %790 = vmatmul.mubr.bf16.gmra.mrb[12].mxu0 %v2807_v24  ;;  %1078 = vmatmul.mubr.bf16.gmra.mrb[12].mxu1 %v2903_v62  ;;  %v2871_v24 = vld [vmem:[#allocation2 + $0x194] ss:$8 sps:$4 sm:$0xff]  }
  0x6c   :  { %797 = vmatprep.mubr.bf16.mxu0 %v2808_v25  ;;  %1085 = vmatprep.mubr.bf16.mxu1 %v2904_v0  ;;  %v2934_v25 = vld [vmem:[#allocation2 + $0x2e4] ss:$8 sps:$4 sm:$0xff]  }
  0x73   :  { %798 = vmatmul.mubr.bf16.gmra.mrb[16].mxu0 %v2810_v26  ;;  %1086 = vmatmul.mubr.bf16.gmra.mrb[16].mxu1 %v2906_v2  ;;  %v2873_v26 = vld [vmem:[#allocation2 + $0x190] ss:$8 sps:$4 sm:$0xff]  }
  0x74   :  { %805 = vmatprep.mubr.bf16.mxu0 %v2811_v27  ;;  %1093 = vmatprep.mubr.bf16.mxu1 %v2907_v4  ;;  %v2936_v27 = vld [vmem:[#allocation2 + $0x2e0] ss:$8 sps:$4 sm:$0xff]  }
  0x7b   :  { %806 = vmatmul.mubr.bf16.gmra.mrb[20].mxu0 %v2813_v28  ;;  %1094 = vmatmul.mubr.bf16.gmra.mrb[20].mxu1 %v2909_v6  ;;  %v2874_v28 = vld [vmem:[#allocation2 + $0x1a4] ss:$8 sps:$4 sm:$0xff]  }
  0x7c   :  { %813 = vmatprep.mubr.bf16.mxu0 %v2814_v29  ;;  %1101 = vmatprep.mubr.bf16.mxu1 %v2910_v8  ;;  %v2937_v29 = vld [vmem:[#allocation2 + $0x2f4] ss:$8 sps:$4 sm:$0xff]  }
  0x83   :  { %814 = vmatmul.mubr.bf16.gmra.mrb[24].mxu0 %v2816_v30  ;;  %1102 = vmatmul.mubr.bf16.gmra.mrb[24].mxu1 %v2912_v10  ;;  %v2876_v30 = vld [vmem:[#allocation2 + $0x1a0] ss:$8 sps:$4 sm:$0xff]  }
  0x84   :  { %821 = vmatprep.mubr.bf16.mxu0 %v2817_v31  ;;  %1109 = vmatprep.mubr.bf16.mxu1 %v2916_v12  ;;  %v2939_v31 = vld [vmem:[#allocation2 + $0x2f0] ss:$8 sps:$4 sm:$0xff]  }
  0x8b   :  { %822 = vmatmul.mubr.bf16.gmra.mrb[28].mxu0 %v2819_v32  ;;  %1110 = vmatmul.mubr.bf16.gmra.mrb[28].mxu1 %v2918_v14  ;;  %v2877_v32 = vld [vmem:[#allocation2 + $0x1b4] ss:$8 sps:$4 sm:$0xff]  }
  0x8c   :  { %829 = vmatprep.mubr.bf16.mxu0 %v2820_v33  ;;  %1117 = vmatprep.mubr.bf16.mxu1 %v2922_v17  ;;  %v1150_v17 = vld [vmem:[%s3487_s2] sm:$0xff] }
  0x8d   :  { %2580 = vmatprep.subr.mxu1 %v1150_v17 }
  0x93   :  { %830 = vmatmul.mubr.bf16.gmra.mrb[32].mxu0 %v2822_v34  ;;  %1118 = vmatmul.mubr.bf16.gmra.mrb[32].mxu1 %v2924_v19 }
  0x94   :  { %837 = vmatprep.mubr.bf16.mxu0 %v2823_v35  ;;  %1125 = vmatprep.mubr.bf16.mxu1 %v2928_v21  ;;  %v2879_v35 = vld [vmem:[#allocation2 + $0x1b0] ss:$8 sps:$4 sm:$0xff]  }
  0x9b   :  { %838 = vmatmul.mubr.bf16.gmra.mrb[36].mxu0 %v2825_v36  ;;  %1126 = vmatmul.mubr.bf16.gmra.mrb[36].mxu1 %v2930_v23 }
  0x9c   :  { %845 = vmatprep.mubr.bf16.mxu0 %v2826_v37  ;;  %1133 = vmatprep.mubr.bf16.mxu1 %v2934_v25  ;;  %v2880_v37 = vld [vmem:[#allocation2 + $0x1c4] ss:$8 sps:$4 sm:$0xff]  }
  0xa3   :  { %846 = vmatmul.mubr.bf16.gmra.mrb[40].mxu0 %v2828_v38  ;;  %1134 = vmatmul.mubr.bf16.gmra.mrb[40].mxu1 %v2936_v27 }
  0xa4   :  { %853 = vmatprep.mubr.bf16.mxu0 %v2829_v39  ;;  %1141 = vmatprep.mubr.bf16.mxu1 %v2937_v29 }
  0xab   :  { %854 = vmatmul.mubr.bf16.gmra.mrb[44].mxu0 %v2831_v40  ;;  %1142 = vmatmul.mubr.bf16.gmra.mrb[44].mxu1 %v2939_v31 }
  0xac   :  { %861 = vmatprep.mubr.bf16.mxu0 %v2832_v41  ;;  %v2882_v41 = vld [vmem:[#allocation2 + $0x1c0] ss:$8 sps:$4 sm:$0xff]  }
  0xb3   :  { %862 = vmatmul.mubr.bf16.gmra.mrb[48].mxu0 %v2834_v42 }
  0xb4   :  { %869 = vmatprep.mubr.bf16.mxu0 %v2835_v43  ;;  %v2883_v43 = vld [vmem:[#allocation2 + $0x1d4] ss:$8 sps:$4 sm:$0xff]  }
  0xbb   :  { %870 = vmatmul.mubr.bf16.gmra.mrb[52].mxu0 %v2837_v44 }
  0xbc   :  { %877 = vmatprep.mubr.bf16.mxu0 %v2838_v45 }
  0xc3   :  { %878 = vmatmul.mubr.bf16.gmra.mrb[56].mxu0 %v2840_v46 }
  0xc4   :  { %885 = vmatprep.mubr.bf16.mxu0 %v2841_v47  ;;  %v2885_v47 = vld [vmem:[#allocation2 + $0x1d0] ss:$8 sps:$4 sm:$0xff]  }
  0xcb   :  { %886 = vmatmul.mubr.bf16.gmra.mrb[60].mxu0 %v2843_v49  ;;  %v2886_v49 = vld [vmem:[#allocation2 + $0x1e4] ss:$8 sps:$4 sm:$0xff]  }
  0xcc   :  { %893 = vmatprep.mubr.bf16.mxu0 %v2844_v51 }
  0xd3   :  { %894 = vmatmul.mubr.bf16.gmra.mrb[64].mxu0 %v2846_v53  ;;  %v2888_v53 = vld [vmem:[#allocation2 + $0x1e0] ss:$8 sps:$4 sm:$0xff]  }
  0xd4   :  { %901 = vmatprep.mubr.bf16.mxu0 %v2847_v55  ;;  %v2892_v55 = vld [vmem:[#allocation2 + $0x1f4] ss:$8 sps:$4 sm:$0xff]  }
  0xdb   :  { %902 = vmatmul.mubr.bf16.gmra.mrb[68].mxu0 %v2849_v57 }
  0xdc   :  { %909 = vmatprep.mubr.bf16.mxu0 %v2850_v59  ;;  %v2894_v59 = vld [vmem:[#allocation2 + $0x1f0] ss:$8 sps:$4 sm:$0xff]  }
  0xe3   :  { %910 = vmatmul.mubr.bf16.gmra.mrb[72].mxu0 %v2852_v61  ;;  %v2913_v61 = vld [vmem:[#allocation2 + $0x204] ss:$8 sps:$4 sm:$0xff]  }
  0xe4   :  { %917 = vmatprep.mubr.bf16.mxu0 %v2853_v63 }
  0xeb   :  { %918 = vmatmul.mubr.bf16.gmra.mrb[76].mxu0 %v2855_v1  ;;  %v2915_v1 = vld [vmem:[#allocation2 + $0x200] ss:$8 sps:$4 sm:$0xff]  }
  0xec   :  { %925 = vmatprep.mubr.bf16.mxu0 %v2856_v3  ;;  %v2919_v3 = vld [vmem:[#allocation2 + $0x214] ss:$8 sps:$4 sm:$0xff]  }
  0xf3   :  { %926 = vmatmul.mubr.bf16.gmra.mrb[80].mxu0 %v2858_v5 }
  0xf4   :  { %933 = vmatprep.mubr.bf16.mxu0 %v2859_v7  ;;  %v2921_v7 = vld [vmem:[#allocation2 + $0x210] ss:$8 sps:$4 sm:$0xff]  }
  0xfb   :  { %934 = vmatmul.mubr.bf16.gmra.mrb[84].mxu0 %v2861_v9  ;;  %v2925_v9 = vld [vmem:[#allocation2 + $0x224] ss:$8 sps:$4 sm:$0xff]  }
  0xfc   :  { %941 = vmatprep.mubr.bf16.mxu0 %v2862_v11 }
 0x103   :  { %942 = vmatmul.mubr.bf16.gmra.mrb[88].mxu0 %v2864_v13  ;;  %v2927_v13 = vld [vmem:[#allocation2 + $0x220] ss:$8 sps:$4 sm:$0xff]  }
 0x104   :  { %949 = vmatprep.mubr.bf16.mxu0 %v2865_v15  ;;  %v2931_v15 = vld [vmem:[#allocation2 + $0x234] ss:$8 sps:$4 sm:$0xff]  }
 0x10b   :  { %950 = vmatmul.mubr.bf16.gmra.mrb[92].mxu0 %v2867_v18 }
 0x10c   :  { %957 = vmatprep.mubr.bf16.mxu0 %v2868_v20  ;;  %v2933_v20 = vld [vmem:[#allocation2 + $0x230] ss:$8 sps:$4 sm:$0xff]  }
 0x113   :  { %958 = vmatmul.mubr.bf16.gmra.mrb[96].mxu0 %v2870_v22 }
 0x114   :  { %965 = vmatprep.mubr.bf16.mxu0 %v2871_v24 }
 0x11b   :  { %966 = vmatmul.mubr.bf16.gmra.mrb[100].mxu0 %v2873_v26 }
 0x11c   :  { %973 = vmatprep.mubr.bf16.mxu0 %v2874_v28 }
 0x123   :  { %974 = vmatmul.mubr.bf16.gmra.mrb[104].mxu0 %v2876_v30 }
 0x124   :  { %981 = vmatprep.mubr.bf16.mxu0 %v2877_v32 }
 0x126   :  { %v3083_v33 = vpop.f32.mrb[0].mxu0 }
 0x127   :  { %v769_v34 = vpop.f32.mrb[1].mxu0 }
 0x128   :  { %v3085_v36 = vpop.f32.mrb[2].mxu0 }
 0x129   :  { %v772_v38 = vpop.f32.mrb[3].mxu0 }
 0x12b   :  { %982 = vmatmul.mubr.bf16.gmra.mrb[108].mxu0 %v2879_v35 }
 0x12c   :  { %989 = vmatprep.mubr.bf16.mxu0 %v2880_v37 }
 0x12e   :  { %v3087_v39 = vpop.f32.mrb[4].mxu0 }
 0x12f   :  { %v777_v40 = vpop.f32.mrb[5].mxu0 }
 0x130   :  { %v3089_v42 = vpop.f32.mrb[6].mxu0 }
 0x131   :  { %v780_v44 = vpop.f32.mrb[7].mxu0 }
 0x133   :  { %990 = vmatmul.mubr.bf16.gmra.mrb[112].mxu0 %v2882_v41 }
 0x134   :  { %997 = vmatprep.mubr.bf16.mxu0 %v2883_v43 }
 0x136   :  { %v3091_v45 = vpop.f32.mrb[8].mxu0 }
 0x137   :  { %v785_v46 = vpop.f32.mrb[9].mxu0 }
 0x138   :  { %v3093_v48 = vpop.f32.mrb[10].mxu0 }
 0x139   :  { %v788_v50 = vpop.f32.mrb[11].mxu0 }
 0x13b   :  { %998 = vmatmul.mubr.bf16.gmra.mrb[116].mxu0 %v2885_v47 }
 0x13c   :  { %1005 = vmatprep.mubr.bf16.mxu0 %v2886_v49 }
 0x13e   :  { %v3095_v51 = vpop.f32.mrb[12].mxu0 }
 0x13f   :  { %v793_v52 = vpop.f32.mrb[13].mxu0 }
 0x140   :  { %v3097_v54 = vpop.f32.mrb[14].mxu0 }
 0x141   :  { %v796_v56 = vpop.f32.mrb[15].mxu0 }
 0x143   :  { %1006 = vmatmul.mubr.bf16.gmra.mrb[120].mxu0 %v2888_v53 }
 0x144   :  { %1013 = vmatprep.mubr.bf16.mxu0 %v2892_v55 }
 0x146   :  { %v3099_v57 = vpop.f32.mrb[16].mxu0 }
 0x147   :  { %v801_v58 = vpop.f32.mrb[17].mxu0 }
 0x148   :  { %v3101_v60 = vpop.f32.mrb[18].mxu0 }
 0x149   :  { %v804_v62 = vpop.f32.mrb[19].mxu0 }
 0x14b   :  { %1014 = vmatmul.mubr.bf16.gmra.mrb[124].mxu0 %v2894_v59 }
 0x14c   :  { %1021 = vmatprep.mubr.bf16.mxu0 %v2913_v61 }
 0x14e   :  { %v3103_v63 = vpop.f32.mrb[20].mxu0 }
 0x14f   :  { %v809_v0 = vpop.f32.mrb[21].mxu0 }
 0x150   :  { %v3105_v2 = vpop.f32.mrb[22].mxu0 }
 0x151   :  { %v812_v4 = vpop.f32.mrb[23].mxu0 }
 0x153   :  { %1022 = vmatmul.mubr.bf16.gmra.mrb[128].mxu0 %v2915_v1  ;;  %v3154_v1 = vld [vmem:[%s3487_s2 + $0x10] sm:$0xff] }
 0x154   :  { %1029 = vmatprep.mubr.bf16.mxu0 %v2919_v3 }
 0x156   :  { %v3107_v5 = vpop.f32.mrb[24].mxu0 }
 0x157   :  { %v817_v6 = vpop.f32.mrb[25].mxu0 }
 0x158   :  { %v3109_v8 = vpop.f32.mrb[26].mxu0 }
 0x159   :  { %v820_v10 = vpop.f32.mrb[27].mxu0 }
 0x15b   :  { %1030 = vmatmul.mubr.bf16.gmra.mrb[132].mxu0 %v2921_v7 }
 0x15c   :  { %1037 = vmatprep.mubr.bf16.mxu0 %v2925_v9 }
 0x15e   :  { %v3111_v11 = vpop.f32.mrb[28].mxu0 }
 0x15f   :  { %v825_v12 = vpop.f32.mrb[29].mxu0 }
 0x160   :  { %v3113_v14 = vpop.f32.mrb[30].mxu0 }
 0x161   :  { %v828_v16 = vpop.f32.mrb[31].mxu0 }
 0x163   :  { %1038 = vmatmul.mubr.bf16.gmra.mrb[136].mxu0 %v2927_v13 }
 0x164   :  { %1045 = vmatprep.mubr.bf16.mxu0 %v2931_v15 }
 0x166   :  { %v3118_v18 = vpop.f32.mrb[32].mxu0 }
 0x167   :  { %v833_v19 = vpop.f32.mrb[33].mxu0 }
 0x168   :  { %v3120_v21 = vpop.f32.mrb[34].mxu0 }
 0x169   :  { %v836_v22 = vpop.f32.mrb[35].mxu0 }
 0x16a   :  { %v3164_v22 = vpop.f32.mrb[0].mxu1 }
 0x16b   :  { %1046 = vmatmul.mubr.bf16.gmra.mrb[140].mxu0 %v2933_v20 }
 0x16e   :  { %v3122_v23 = vpop.f32.mrb[36].mxu0 }
 0x16f   :  { %v841_v24 = vpop.f32.mrb[37].mxu0 }
 0x170   :  { %v3124_v25 = vpop.f32.mrb[38].mxu0  ;;  %v1057_v24 = vpop.f32.mrb[1].mxu1 }
 0x171   :  { %v844_v26 = vpop.f32.mrb[39].mxu0 }
 0x172   :  { %v3166_v26 = vpop.f32.mrb[2].mxu1 }
 0x176   :  { %v3126_v27 = vpop.f32.mrb[40].mxu0 }
 0x177   :  { %v849_v28 = vpop.f32.mrb[41].mxu0 }
 0x178   :  { %v3128_v29 = vpop.f32.mrb[42].mxu0  ;;  %v1060_v28 = vpop.f32.mrb[3].mxu1 }
 0x179   :  { %v852_v30 = vpop.f32.mrb[43].mxu0 }
 0x17e   :  { %v3130_v31 = vpop.f32.mrb[44].mxu0 }
 0x17f   :  { %v857_v32 = vpop.f32.mrb[45].mxu0 }
 0x180   :  { %v3132_v34 = vpop.f32.mrb[46].mxu0 }
 0x181   :  { %v860_v35 = vpop.f32.mrb[47].mxu0 }
 0x186   :  { %v3134_v37 = vpop.f32.mrb[48].mxu0 }
 0x187   :  { %v865_v38 = vpop.f32.mrb[49].mxu0 }
 0x188   :  { %v3136_v40 = vpop.f32.mrb[50].mxu0 }
 0x189   :  { %v868_v41 = vpop.f32.mrb[51].mxu0 }
 0x18a   :  { %v3170_v41 = vpop.f32.mrb[4].mxu1 }
 0x18e   :  { %v3138_v43 = vpop.f32.mrb[52].mxu0 }
 0x18f   :  { %v873_v44 = vpop.f32.mrb[53].mxu0 }
 0x190   :  { %v3140_v46 = vpop.f32.mrb[54].mxu0  ;;  %v1065_v44 = vpop.f32.mrb[5].mxu1 }
 0x191   :  { %v876_v47 = vpop.f32.mrb[55].mxu0 }
 0x192   :  { %v3172_v47 = vpop.f32.mrb[6].mxu1 }
 0x196   :  { %v3142_v49 = vpop.f32.mrb[56].mxu0 }
 0x197   :  { %v881_v50 = vpop.f32.mrb[57].mxu0 }
 0x198   :  { %v3144_v52 = vpop.f32.mrb[58].mxu0  ;;  %v1068_v50 = vpop.f32.mrb[7].mxu1 }
 0x199   :  { %v884_v53 = vpop.f32.mrb[59].mxu0 }
 0x19e   :  { %v3146_v55 = vpop.f32.mrb[60].mxu0 }
 0x19f   :  { %v889_v56 = vpop.f32.mrb[61].mxu0 }
 0x1a0   :  { %v3148_v58 = vpop.f32.mrb[62].mxu0 }
 0x1a1   :  { %v892_v59 = vpop.f32.mrb[63].mxu0 }
 0x1a6   :  { %v895_v61 = vpop.f32.mrb[64].mxu0 }
 0x1a7   :  { %v897_v62 = vpop.f32.mrb[65].mxu0  ;;  %2532 = vmatprep.mubr.msk.f32.mxu1 %vm1153_vm0, %v895_v61 }
 0x1a8   :  { %v898_v0 = vpop.f32.mrb[66].mxu0  ;;  %v3176_v62 = vpop.f32.mrb[8].mxu1 }
 0x1a9   :  { %v900_v3 = vpop.f32.mrb[67].mxu0  ;;  %2533 = vmatmul.mubr.msk.f32.vlgmr.msra.gmra.mrb[48].mxu1 %vm1153_vm0, %v898_v0  ;;  %v1073_v0 = vpop.f32.mrb[9].mxu1 }
 0x1aa   :  { %2581 = vmatpush3.msra.mxu1 %v1150_v17  ;;  %v3178_v3 = vpop.f32.mrb[10].mxu1 }
 0x1ab   :  { %2630 = vmatprep.subr.mxu1 %v3154_v1 }
 0x1ae   :  { %v903_v4 = vpop.f32.mrb[68].mxu0 }
 0x1af   :  { %v905_v6 = vpop.f32.mrb[69].mxu0  ;;  %2535 = vmatprep.mubr.msk.f32.mxu1 %vm1153_vm0, %v903_v4  ;;  %v1076_v4 = vpop.f32.mrb[11].mxu1 }
 0x1b0   :  { %v906_v7 = vpop.f32.mrb[70].mxu0 }
 0x1b1   :  { %v908_v9 = vpop.f32.mrb[71].mxu0  ;;  %2536 = vmatmul.mubr.msk.f32.gmra.mrb[50].mxu1 %vm1153_vm0, %v906_v7 }
 0x1b6   :  { %v911_v10 = vpop.f32.mrb[72].mxu0 }
 0x1b7   :  { %v913_v12 = vpop.f32.mrb[73].mxu0  ;;  %2538 = vmatprep.mubr.msk.f32.mxu1 %vm1153_vm0, %v911_v10 }
 0x1b8   :  { %v914_v13 = vpop.f32.mrb[74].mxu0  ;;  %v3182_v12 = vpop.f32.mrb[12].mxu1 }
 0x1b9   :  { %v916_v15 = vpop.f32.mrb[75].mxu0  ;;  %2539 = vmatmul.mubr.msk.f32.gmra.mrb[52].mxu1 %vm1153_vm0, %v914_v13  ;;  %v1081_v13 = vpop.f32.mrb[13].mxu1 }
 0x1ba   :  { %v3184_v15 = vpop.f32.mrb[14].mxu1 }
 0x1be   :  { %v919_v16 = vpop.f32.mrb[76].mxu0 }
 0x1bf   :  { %v921_v17 = vpop.f32.mrb[77].mxu0  ;;  %2541 = vmatprep.mubr.msk.f32.mxu1 %vm1153_vm0, %v919_v16  ;;  %v1084_v16 = vpop.f32.mrb[15].mxu1 }
 0x1c0   :  { %v922_v19 = vpop.f32.mrb[78].mxu0  ;;  %v3188_v28 = vpop.f32.mrb[16].mxu1 }
 0x1c1   :  { %v924_v20 = vpop.f32.mrb[79].mxu0  ;;  %2542 = vmatmul.mubr.msk.f32.gmra.mrb[54].mxu1 %vm1153_vm0, %v922_v19 }
 0x1c6   :  { %v927_v30 = vpop.f32.mrb[80].mxu0 }
 0x1c7   :  { %v929_v32 = vpop.f32.mrb[81].mxu0  ;;  %2544 = vmatprep.mubr.msk.f32.mxu1 %vm1153_vm0, %v927_v30  ;;  %v1089_v30 = vpop.f32.mrb[17].mxu1 }
 0x1c8   :  { %v930_v35 = vpop.f32.mrb[82].mxu0  ;;  %v3190_v32 = vpop.f32.mrb[18].mxu1 }
 0x1c9   :  { %v932_v38 = vpop.f32.mrb[83].mxu0  ;;  %2545 = vmatmul.mubr.msk.f32.gmra.mrb[56].mxu1 %vm1153_vm0, %v930_v35  ;;  %v1092_v35 = vpop.f32.mrb[19].mxu1 }
 0x1ce   :  { %v935_v53 = vpop.f32.mrb[84].mxu0 }
 0x1cf   :  { %v937_v56 = vpop.f32.mrb[85].mxu0  ;;  %2547 = vmatprep.mubr.msk.f32.mxu1 %vm1153_vm0, %v935_v53 }
 0x1d0   :  { %v938_v59 = vpop.f32.mrb[86].mxu0  ;;  %v3194_v56 = vpop.f32.mrb[20].mxu1 }
 0x1d1   :  { %v940_v61 = vpop.f32.mrb[87].mxu0  ;;  %2548 = vmatmul.mubr.msk.f32.gmra.mrb[58].mxu1 %vm1153_vm0, %v938_v59  ;;  %v1097_v59 = vpop.f32.mrb[21].mxu1 }
 0x1d2   :  { %v3196_v61 = vpop.f32.mrb[22].mxu1 }
 0x1d3   :  { %v1100_v0 = vpop.f32.mrb[23].mxu1 }
 0x1d6   :  { %v943_v6 = vpop.f32.mrb[88].mxu0 }
 0x1d7   :  { %v945_v7 = vpop.f32.mrb[89].mxu0  ;;  %2550 = vmatprep.mubr.msk.f32.mxu1 %vm1153_vm0, %v943_v6 }
 0x1d8   :  { %v946_v9 = vpop.f32.mrb[90].mxu0 }
 0x1d9   :  { %v948_v10 = vpop.f32.mrb[91].mxu0  ;;  %2551 = vmatmul.mubr.msk.f32.gmra.mrb[60].mxu1 %vm1153_vm0, %v946_v9 }
 0x1da   :  { %v3200_v10 = vpop.f32.mrb[24].mxu1 }
 0x1db   :  { %v1105_v13 = vpop.f32.mrb[25].mxu1 }
 0x1dc   :  { %v3202_v16 = vpop.f32.mrb[26].mxu1 }
 0x1de   :  { %v951_v17 = vpop.f32.mrb[92].mxu0 }
 0x1df   :  { %v953_v19 = vpop.f32.mrb[93].mxu0  ;;  %2553 = vmatprep.mubr.msk.f32.mxu1 %vm1153_vm0, %v951_v17  ;;  %v1108_v17 = vpop.f32.mrb[27].mxu1 }
 0x1e0   :  { %v954_v20 = vpop.f32.mrb[94].mxu0  ;;  %v3206_v35 = vpop.f32.mrb[28].mxu1 }
 0x1e1   :  { %v956_v24 = vpop.f32.mrb[95].mxu0  ;;  %2554 = vmatmul.mubr.msk.f32.gmra.mrb[62].mxu1 %vm1153_vm0, %v954_v20 }
 0x1e6   :  { %v959_v38 = vpop.f32.mrb[96].mxu0 }
 0x1e7   :  { %v961_v44 = vpop.f32.mrb[97].mxu0  ;;  %2556 = vmatprep.mubr.msk.f32.mxu1 %vm1153_vm0, %v959_v38  ;;  %v1113_v38 = vpop.f32.mrb[29].mxu1 }
 0x1e8   :  { %v962_v50 = vpop.f32.mrb[98].mxu0  ;;  %v3208_v44 = vpop.f32.mrb[30].mxu1 }
 0x1e9   :  { %v964_v53 = vpop.f32.mrb[99].mxu0  ;;  %2557 = vmatmul.mubr.msk.f32.gmra.mrb[64].mxu1 %vm1153_vm0, %v962_v50  ;;  %v1116_v50 = vpop.f32.mrb[31].mxu1 }
 0x1ee   :  { %v967_v4 = vpop.f32.mrb[100].mxu0 }
 0x1ef   :  { %v969_v6 = vpop.f32.mrb[101].mxu0  ;;  %2559 = vmatprep.mubr.msk.f32.mxu1 %vm1153_vm0, %v967_v4 }
 0x1f0   :  { %v970_v7 = vpop.f32.mrb[102].mxu0  ;;  %v3212_v6 = vpop.f32.mrb[32].mxu1 }
 0x1f1   :  { %v972_v9 = vpop.f32.mrb[103].mxu0  ;;  %2560 = vmatmul.mubr.msk.f32.gmra.mrb[66].mxu1 %vm1153_vm0, %v970_v7  ;;  %v1121_v7 = vpop.f32.mrb[33].mxu1 }
 0x1f2   :  { %v3214_v9 = vpop.f32.mrb[34].mxu1 }
 0x1f3   :  { %v1124_v13 = vpop.f32.mrb[35].mxu1 }
 0x1f6   :  { %v975_v19 = vpop.f32.mrb[104].mxu0 }
 0x1f7   :  { %v977_v20 = vpop.f32.mrb[105].mxu0  ;;  %2562 = vmatprep.mubr.msk.f32.mxu1 %vm1153_vm0, %v975_v19 }
 0x1f8   :  { %v978_v24 = vpop.f32.mrb[106].mxu0 }
 0x1f9   :  { %v980_v30 = vpop.f32.mrb[107].mxu0  ;;  %2563 = vmatmul.mubr.msk.f32.gmra.mrb[68].mxu1 %vm1153_vm0, %v978_v24 }
 0x1fa   :  { %v3218_v30 = vpop.f32.mrb[36].mxu1 }
 0x1fb   :  { %3489 = vst [vmem:[#allocation5_spill] sm:$0xff] %v3218_v30  ;;  %v1129_v38 = vpop.f32.mrb[37].mxu1 }
 0x1fc   :  { %v3220_v50 = vpop.f32.mrb[38].mxu1 }
 0x1fd   :  { %3490 = vst [vmem:[#allocation6_spill] sm:$0xff] %v3220_v50 }
 0x1fe   :  { %v983_v53 = vpop.f32.mrb[108].mxu0 }
 0x1ff   :  { %v985_v59 = vpop.f32.mrb[109].mxu0  ;;  %2565 = vmatprep.mubr.msk.f32.mxu1 %vm1153_vm0, %v983_v53  ;;  %v1132_v53 = vpop.f32.mrb[39].mxu1 }
 0x200   :  { %v986_v0 = vpop.f32.mrb[110].mxu0  ;;  %v3224_v13 = vpop.f32.mrb[40].mxu1 }
 0x201   :  { %v988_v4 = vpop.f32.mrb[111].mxu0  ;;  %2566 = vmatmul.mubr.msk.f32.gmra.mrb[70].mxu1 %vm1153_vm0, %v986_v0  ;;  %3491 = vst [vmem:[#allocation7_spill] sm:$0xff] %v3224_v13 }
 0x206   :  { %v991_v17 = vpop.f32.mrb[112].mxu0 }
 0x207   :  { %v993_v19 = vpop.f32.mrb[113].mxu0  ;;  %2568 = vmatprep.mubr.msk.f32.mxu1 %vm1153_vm0, %v991_v17  ;;  %v1137_v17 = vpop.f32.mrb[41].mxu1 }
 0x208   :  { %v994_v20 = vpop.f32.mrb[114].mxu0  ;;  %v3226_v19 = vpop.f32.mrb[42].mxu1 }
 0x209   :  { %v996_v24 = vpop.f32.mrb[115].mxu0  ;;  %2569 = vmatmul.mubr.msk.f32.gmra.mrb[72].mxu1 %vm1153_vm0, %v994_v20  ;;  %v1140_v20 = vpop.f32.mrb[43].mxu1 }
 0x20e   :  { %v999_v59 = vpop.f32.mrb[116].mxu0 }
 0x20f   :  { %v1001_v0 = vpop.f32.mrb[117].mxu0  ;;  %2571 = vmatprep.mubr.msk.f32.mxu1 %vm1153_vm0, %v999_v59 }
 0x210   :  { %v1002_v4 = vpop.f32.mrb[118].mxu0  ;;  %v3230_v0 = vpop.f32.mrb[44].mxu1 }
 0x211   :  { %v1004_v7 = vpop.f32.mrb[119].mxu0  ;;  %2572 = vmatmul.mubr.msk.f32.gmra.mrb[74].mxu1 %vm1153_vm0, %v1002_v4  ;;  %v1145_v59 = vpop.f32.mrb[45].mxu1 }
 0x212   :  { %v3232_v7 = vpop.f32.mrb[46].mxu1 }
 0x213   :  { %v1148_v4 = vpop.f32.mrb[47].mxu1 }
 0x216   :  { %v1007_v24 = vpop.f32.mrb[120].mxu0 }
 0x217   :  { %v1009_v30 = vpop.f32.mrb[121].mxu0  ;;  %2574 = vmatprep.mubr.msk.f32.mxu1 %vm1153_vm0, %v1007_v24 }
 0x218   :  { %v1010_v38 = vpop.f32.mrb[122].mxu0 }
 0x219   :  { %v1012_v53 = vpop.f32.mrb[123].mxu0  ;;  %2575 = vmatmul.mubr.msk.f32.gmra.mrb[76].mxu1 %vm1153_vm0, %v1010_v38 }
 0x21e   :  { %v1015_v50 = vpop.f32.mrb[124].mxu0 }
 0x21f   :  { %v1017_v13 = vpop.f32.mrb[125].mxu0  ;;  %2577 = vmatprep.mubr.msk.f32.mxu1 %vm1153_vm0, %v1015_v50 }
 0x220   :  { %v1018_v17 = vpop.f32.mrb[126].mxu0 }
 0x221   :  { %v1020_v20 = vpop.f32.mrb[127].mxu0  ;;  %2578 = vmatmul.mubr.msk.f32.gmra.mrb[78].mxu1 %vm1153_vm0, %v1018_v17 }
 0x222   :  { %2582 = vmatprep.mubr.msk.f32.mxu1 %vm1153_vm0, %v3083_v33 }
 0x225   :  { %2583 = vmatmul.mubr.msk.f32.vlgmr.msra.gmra.mrb[48].mxu1 %vm1153_vm0, %v3085_v36 }
 0x226   :  { %2631 = vmatpush3.msra.mxu1 %v3154_v1  ;;  %2585 = vmatprep.mubr.msk.f32.mxu1 %vm1153_vm0, %v3087_v39  ;;  %v1023_v30 = vpop.f32.mrb[128].mxu0 }
 0x227   :  { %v1025_v24 = vpop.f32.mrb[129].mxu0 }
 0x228   :  { %v1026_v13 = vpop.f32.mrb[130].mxu0 }
 0x229   :  { %2586 = vmatmul.mubr.msk.f32.gmra.mrb[50].mxu1 %vm1153_vm0, %v3089_v42  ;;  %v1028_v50 = vpop.f32.mrb[131].mxu0 }
 0x22a   :  { %2588 = vmatprep.mubr.msk.f32.mxu1 %vm1153_vm0, %v3091_v45 }
 0x22d   :  { %2589 = vmatmul.mubr.msk.f32.gmra.mrb[52].mxu1 %vm1153_vm0, %v3093_v48 }
 0x22e   :  { %2591 = vmatprep.mubr.msk.f32.mxu1 %vm1153_vm0, %v3095_v51  ;;  %v1031_v33 = vpop.f32.mrb[132].mxu0 }
 0x22f   :  { %v1033_v36 = vpop.f32.mrb[133].mxu0 }
 0x230   :  { %v1034_v1 = vpop.f32.mrb[134].mxu0 }
 0x231   :  { %2592 = vmatmul.mubr.msk.f32.gmra.mrb[54].mxu1 %vm1153_vm0, %v3097_v54  ;;  %v1036_v39 = vpop.f32.mrb[135].mxu0 }
 0x232   :  { %2594 = vmatprep.mubr.msk.f32.mxu1 %vm1153_vm0, %v3099_v57 }
 0x235   :  { %2595 = vmatmul.mubr.msk.f32.gmra.mrb[56].mxu1 %vm1153_vm0, %v3101_v60 }
 0x236   :  { %2597 = vmatprep.mubr.msk.f32.mxu1 %vm1153_vm0, %v3103_v63  ;;  %v1039_v42 = vpop.f32.mrb[136].mxu0 }
 0x237   :  { %v1041_v45 = vpop.f32.mrb[137].mxu0 }
 0x238   :  { %v1042_v48 = vpop.f32.mrb[138].mxu0 }
 0x239   :  { %2598 = vmatmul.mubr.msk.f32.gmra.mrb[58].mxu1 %vm1153_vm0, %v3105_v2  ;;  %v1044_v51 = vpop.f32.mrb[139].mxu0  ;;  %v3492_v2 = vld [vmem:[#allocation5_spill] sm:$0xff] }
 0x23a   :  { %2600 = vmatprep.mubr.msk.f32.mxu1 %vm1153_vm0, %v3107_v5  ;;  %v3493_v5 = vld [vmem:[#allocation6_spill] sm:$0xff] }
 0x23d   :  { %2601 = vmatmul.mubr.msk.f32.gmra.mrb[60].mxu1 %vm1153_vm0, %v3109_v8  ;;  %v3494_v8 = vld [vmem:[#allocation7_spill] sm:$0xff] }
 0x23e   :  { %2603 = vmatprep.mubr.msk.f32.mxu1 %vm1153_vm0, %v3111_v11  ;;  %v1047_v54 = vpop.f32.mrb[140].mxu0 }
 0x23f   :  { %v1049_v57 = vpop.f32.mrb[141].mxu0 }
 0x240   :  { %v1050_v60 = vpop.f32.mrb[142].mxu0 }
 0x241   :  { %2604 = vmatmul.mubr.msk.f32.gmra.mrb[62].mxu1 %vm1153_vm0, %v3113_v14  ;;  %v1052_v63 = vpop.f32.mrb[143].mxu0 }
 0x242   :  { %2606 = vmatprep.mubr.msk.f32.mxu1 %vm1153_vm0, %v3118_v18 }
 0x245   :  { %2607 = vmatmul.mubr.msk.f32.gmra.mrb[64].mxu1 %vm1153_vm0, %v3120_v21 }
 0x246   :  { %2609 = vmatprep.mubr.msk.f32.mxu1 %vm1153_vm0, %v3122_v23 }
 0x249   :  { %2610 = vmatmul.mubr.msk.f32.gmra.mrb[66].mxu1 %vm1153_vm0, %v3124_v25 }
 0x24a   :  { %2612 = vmatprep.mubr.msk.f32.mxu1 %vm1153_vm0, %v3126_v27 }
 0x24d   :  { %2613 = vmatmul.mubr.msk.f32.gmra.mrb[68].mxu1 %vm1153_vm0, %v3128_v29 }
 0x24e   :  { %2615 = vmatprep.mubr.msk.f32.mxu1 %vm1153_vm0, %v3130_v31 }
 0x251   :  { %2616 = vmatmul.mubr.msk.f32.gmra.mrb[70].mxu1 %vm1153_vm0, %v3132_v34 }
 0x252   :  { %2618 = vmatprep.mubr.msk.f32.mxu1 %vm1153_vm0, %v3134_v37 }
 0x255   :  { %2619 = vmatmul.mubr.msk.f32.gmra.mrb[72].mxu1 %vm1153_vm0, %v3136_v40 }
 0x256   :  { %2621 = vmatprep.mubr.msk.f32.mxu1 %vm1153_vm0, %v3138_v43 }
 0x259   :  { %2622 = vmatmul.mubr.msk.f32.gmra.mrb[74].mxu1 %vm1153_vm0, %v3140_v46 }
 0x25a   :  { %2624 = vmatprep.mubr.msk.f32.mxu1 %vm1153_vm0, %v3142_v49 }
 0x25d   :  { %2625 = vmatmul.mubr.msk.f32.gmra.mrb[76].mxu1 %vm1153_vm0, %v3144_v52 }
 0x25e   :  { %2627 = vmatprep.mubr.msk.f32.mxu1 %vm1153_vm0, %v3146_v55 }
 0x261   :  { %2628 = vmatmul.mubr.msk.f32.gmra.mrb[78].mxu1 %vm1153_vm0, %v3148_v58 }
 0x262   :  { %2632 = vmatprep.mubr.msk.f32.mxu1 %vm1153_vm0, %v1023_v30 }
 0x265   :  { %2633 = vmatmul.mubr.msk.f32.vlgmr.msra.gmra.mrb[48].mxu1 %vm1153_vm0, %v1026_v13 }
 0x266   :  { %2635 = vmatprep.mubr.msk.f32.mxu1 %vm1153_vm0, %v1031_v33 }
 0x269   :  { %2636 = vmatmul.mubr.msk.f32.gmra.mrb[50].mxu1 %vm1153_vm0, %v1034_v1 }
 0x26a   :  { %2638 = vmatprep.mubr.msk.f32.mxu1 %vm1153_vm0, %v1039_v42 }
 0x26d   :  { %2639 = vmatmul.mubr.msk.f32.gmra.mrb[52].mxu1 %vm1153_vm0, %v1042_v48 }
 0x26e   :  { %2641 = vmatprep.mubr.msk.f32.mxu1 %vm1153_vm0, %v1047_v54 }
 0x271   :  { %2642 = vmatmul.mubr.msk.f32.gmra.mrb[54].mxu1 %vm1153_vm0, %v1050_v60 }
 0x272   :  { %2644 = vmatprep.mubr.msk.f32.mxu1 %vm1153_vm0, %v3164_v22 }
 0x275   :  { %2645 = vmatmul.mubr.msk.f32.gmra.mrb[56].mxu1 %vm1153_vm0, %v3166_v26 }
 0x276   :  { %2647 = vmatprep.mubr.msk.f32.mxu1 %vm1153_vm0, %v3170_v41 }
 0x279   :  { %2648 = vmatmul.mubr.msk.f32.gmra.mrb[58].mxu1 %vm1153_vm0, %v3172_v47 }
 0x27a   :  { %2650 = vmatprep.mubr.msk.f32.mxu1 %vm1153_vm0, %v3176_v62 }
 0x27d   :  { %2651 = vmatmul.mubr.msk.f32.gmra.mrb[60].mxu1 %vm1153_vm0, %v3178_v3 }
 0x27e   :  { %2653 = vmatprep.mubr.msk.f32.mxu1 %vm1153_vm0, %v3182_v12 }
 0x281   :  { %2654 = vmatmul.mubr.msk.f32.gmra.mrb[62].mxu1 %vm1153_vm0, %v3184_v15 }
 0x282   :  { %2656 = vmatprep.mubr.msk.f32.mxu1 %vm1153_vm0, %v3188_v28 }
 0x285   :  { %2657 = vmatmul.mubr.msk.f32.gmra.mrb[64].mxu1 %vm1153_vm0, %v3190_v32 }
 0x286   :  { %2659 = vmatprep.mubr.msk.f32.mxu1 %vm1153_vm0, %v3194_v56 }
 0x289   :  { %2660 = vmatmul.mubr.msk.f32.gmra.mrb[66].mxu1 %vm1153_vm0, %v3196_v61 }
 0x28a   :  { %2662 = vmatprep.mubr.msk.f32.mxu1 %vm1153_vm0, %v3200_v10 }
 0x28d   :  { %2663 = vmatmul.mubr.msk.f32.gmra.mrb[68].mxu1 %vm1153_vm0, %v3202_v16 }
 0x28e   :  { %2665 = vmatprep.mubr.msk.f32.mxu1 %vm1153_vm0, %v3206_v35 }
 0x291   :  { %2666 = vmatmul.mubr.msk.f32.gmra.mrb[70].mxu1 %vm1153_vm0, %v3208_v44 }
 0x292   :  { %2668 = vmatprep.mubr.msk.f32.mxu1 %vm1153_vm0, %v3212_v6 }
 0x295   :  { %2669 = vmatmul.mubr.msk.f32.gmra.mrb[72].mxu1 %vm1153_vm0, %v3214_v9 }
 0x296   :  { %2671 = vmatprep.mubr.msk.f32.mxu1 %vm1153_vm0, %v3492_v2 }
 0x299   :  { %2672 = vmatmul.mubr.msk.f32.gmra.mrb[74].mxu1 %vm1153_vm0, %v3493_v5 }
 0x29a   :  { %2674 = vmatprep.mubr.msk.f32.mxu1 %vm1153_vm0, %v3494_v8 }
 0x29d   :  { %2675 = vmatmul.mubr.msk.f32.gmra.mrb[76].mxu1 %vm1153_vm0, %v3226_v19 }
 0x29e   :  { %2677 = vmatprep.mubr.msk.f32.mxu1 %vm1153_vm0, %v3230_v0 }
 0x2a1   :  { %2678 = vmatmul.mubr.msk.f32.gmra.mrb[78].mxu1 %vm1153_vm0, %v3232_v7 }
 0x338   :  { %v2634_v11 = vpop.f32.mrb[48].mxu1 }
 0x339   :  { %v2152_v14 = vmax.f32 %v2634_v11, 0.0  ;;  %v1960_v18 = vpop.f32.mrb[49].mxu1 }
 0x33a   :  { %v2151_v21 = vmax.f32 %v1960_v18, 0.0 }
 0x33b   :  { %2185 = vst.msk [vmem:[%s3488_s3 + $0x8] sm:$0xff] %vm2183_vm1, %v2152_v14 }
 0x33c   :  { %2184 = vst.msk [vmem:[%s3488_s3] sm:$0xff] %vm2183_vm1, %v2151_v21  ;;  %v2637_v23 = vpop.f32.mrb[50].mxu1 }
 0x33d   :  { %v2154_v25 = vmax.f32 %v2637_v23, 0.0  ;;  %v1970_v27 = vpop.f32.mrb[51].mxu1 }
 0x33e   :  { %v2153_v29 = vmax.f32 %v1970_v27, 0.0 }
 0x33f   :  { %2187 = vst.msk [vmem:[%s3488_s3 + $0x18] sm:$0xff] %vm2183_vm1, %v2154_v25 }
 0x340   :  { %2186 = vst.msk [vmem:[%s3488_s3 + $0x10] sm:$0xff] %vm2183_vm1, %v2153_v29  ;;  %v2640_v31 = vpop.f32.mrb[52].mxu1 }
 0x341   :  { %v2156_v34 = vmax.f32 %v2640_v31, 0.0  ;;  %v1980_v37 = vpop.f32.mrb[53].mxu1 }
 0x342   :  { %v2155_v40 = vmax.f32 %v1980_v37, 0.0 }
 0x343   :  { %2189 = vst.msk [vmem:[%s3488_s3 + $0x28] sm:$0xff] %vm2183_vm1, %v2156_v34 }
 0x344   :  { %2188 = vst.msk [vmem:[%s3488_s3 + $0x20] sm:$0xff] %vm2183_vm1, %v2155_v40  ;;  %v2643_v43 = vpop.f32.mrb[54].mxu1 }
 0x345   :  { %v2158_v46 = vmax.f32 %v2643_v43, 0.0  ;;  %v1990_v49 = vpop.f32.mrb[55].mxu1 }
 0x346   :  { %v2157_v52 = vmax.f32 %v1990_v49, 0.0 }
 0x347   :  { %2191 = vst.msk [vmem:[%s3488_s3 + $0x38] sm:$0xff] %vm2183_vm1, %v2158_v46 }
 0x348   :  { %2190 = vst.msk [vmem:[%s3488_s3 + $0x30] sm:$0xff] %vm2183_vm1, %v2157_v52  ;;  %v2646_v55 = vpop.f32.mrb[56].mxu1 }
 0x349   :  { %v2160_v58 = vmax.f32 %v2646_v55, 0.0  ;;  %v2000_v22 = vpop.f32.mrb[57].mxu1 }
 0x34a   :  { %v2159_v26 = vmax.f32 %v2000_v22, 0.0 }
 0x34b   :  { %2193 = vst.msk [vmem:[%s3488_s3 + $0x48] sm:$0xff] %vm2183_vm1, %v2160_v58 }
 0x34c   :  { %2192 = vst.msk [vmem:[%s3488_s3 + $0x40] sm:$0xff] %vm2183_vm1, %v2159_v26  ;;  %v2649_v41 = vpop.f32.mrb[58].mxu1 }
 0x34d   :  { %v2162_v47 = vmax.f32 %v2649_v41, 0.0  ;;  %v2010_v62 = vpop.f32.mrb[59].mxu1 }
 0x34e   :  { %v2161_v3 = vmax.f32 %v2010_v62, 0.0 }
 0x34f   :  { %2195 = vst.msk [vmem:[%s3488_s3 + $0x58] sm:$0xff] %vm2183_vm1, %v2162_v47 }
 0x350   :  { %2194 = vst.msk [vmem:[%s3488_s3 + $0x50] sm:$0xff] %vm2183_vm1, %v2161_v3  ;;  %v2652_v12 = vpop.f32.mrb[60].mxu1 }
 0x351   :  { %v2164_v15 = vmax.f32 %v2652_v12, 0.0  ;;  %v2020_v28 = vpop.f32.mrb[61].mxu1 }
 0x352   :  { %v2163_v32 = vmax.f32 %v2020_v28, 0.0 }
 0x353   :  { %2197 = vst.msk [vmem:[%s3488_s3 + $0x68] sm:$0xff] %vm2183_vm1, %v2164_v15 }
 0x354   :  { %2196 = vst.msk [vmem:[%s3488_s3 + $0x60] sm:$0xff] %vm2183_vm1, %v2163_v32  ;;  %v2655_v56 = vpop.f32.mrb[62].mxu1 }
 0x355   :  { %v2166_v61 = vmax.f32 %v2655_v56, 0.0  ;;  %v2030_v10 = vpop.f32.mrb[63].mxu1 }
 0x356   :  { %v2165_v16 = vmax.f32 %v2030_v10, 0.0 }
 0x357   :  { %2199 = vst.msk [vmem:[%s3488_s3 + $0x78] sm:$0xff] %vm2183_vm1, %v2166_v61 }
 0x358   :  { %2198 = vst.msk [vmem:[%s3488_s3 + $0x70] sm:$0xff] %vm2183_vm1, %v2165_v16  ;;  %v2658_v35 = vpop.f32.mrb[64].mxu1 }
 0x359   :  { %v2168_v44 = vmax.f32 %v2658_v35, 0.0  ;;  %v2040_v6 = vpop.f32.mrb[65].mxu1 }
 0x35a   :  { %v2167_v9 = vmax.f32 %v2040_v6, 0.0 }
 0x35b   :  { %2201 = vst.msk [vmem:[%s3488_s3 + $0x88] sm:$0xff] %vm2183_vm1, %v2168_v44 }
 0x35c   :  { %2200 = vst.msk [vmem:[%s3488_s3 + $0x80] sm:$0xff] %vm2183_vm1, %v2167_v9  ;;  %v2661_v19 = vpop.f32.mrb[66].mxu1 }
 0x35d   :  { %v2170_v38 = vmax.f32 %v2661_v19, 0.0  ;;  %v2050_v53 = vpop.f32.mrb[67].mxu1 }
 0x35e   :  { %v2169_v0 = vmax.f32 %v2050_v53, 0.0 }
 0x35f   :  { %2203 = vst.msk [vmem:[%s3488_s3 + $0x98] sm:$0xff] %vm2183_vm1, %v2170_v38 }
 0x360   :  { %2202 = vst.msk [vmem:[%s3488_s3 + $0x90] sm:$0xff] %vm2183_vm1, %v2169_v0  ;;  %v2664_v59 = vpop.f32.mrb[68].mxu1 }
 0x361   :  { %v2172_v7 = vmax.f32 %v2664_v59, 0.0  ;;  %v2060_v4 = vpop.f32.mrb[69].mxu1 }
 0x362   :  { %v2171_v17 = vmax.f32 %v2060_v4, 0.0 }
 0x363   :  { %2205 = vst.msk [vmem:[%s3488_s3 + $0xa8] sm:$0xff] %vm2183_vm1, %v2172_v7 }
 0x364   :  { %2204 = vst.msk [vmem:[%s3488_s3 + $0xa0] sm:$0xff] %vm2183_vm1, %v2171_v17  ;;  %v2667_v20 = vpop.f32.mrb[70].mxu1 }
 0x365   :  { %v2174_v30 = vmax.f32 %v2667_v20, 0.0  ;;  %v2070_v24 = vpop.f32.mrb[71].mxu1 }
 0x366   :  { %v2173_v13 = vmax.f32 %v2070_v24, 0.0 }
 0x367   :  { %2207 = vst.msk [vmem:[%s3488_s3 + $0xb8] sm:$0xff] %vm2183_vm1, %v2174_v30 }
 0x368   :  { %2206 = vst.msk [vmem:[%s3488_s3 + $0xb0] sm:$0xff] %vm2183_vm1, %v2173_v13  ;;  %v2670_v50 = vpop.f32.mrb[72].mxu1 }
 0x369   :  { %v2176_v33 = vmax.f32 %v2670_v50, 0.0  ;;  %v2080_v36 = vpop.f32.mrb[73].mxu1 }
 0x36a   :  { %v2175_v1 = vmax.f32 %v2080_v36, 0.0 }
 0x36b   :  { %2209 = vst.msk [vmem:[%s3488_s3 + $0xc8] sm:$0xff] %vm2183_vm1, %v2176_v33 }
 0x36c   :  { %2208 = vst.msk [vmem:[%s3488_s3 + $0xc0] sm:$0xff] %vm2183_vm1, %v2175_v1  ;;  %v2673_v39 = vpop.f32.mrb[74].mxu1 }
 0x36d   :  { %v2178_v42 = vmax.f32 %v2673_v39, 0.0  ;;  %v2090_v45 = vpop.f32.mrb[75].mxu1 }
 0x36e   :  { %v2177_v48 = vmax.f32 %v2090_v45, 0.0 }
 0x36f   :  { %2211 = vst.msk [vmem:[%s3488_s3 + $0xd8] sm:$0xff] %vm2183_vm1, %v2178_v42 }
 0x370   :  { %2210 = vst.msk [vmem:[%s3488_s3 + $0xd0] sm:$0xff] %vm2183_vm1, %v2177_v48  ;;  %v2676_v51 = vpop.f32.mrb[76].mxu1 }
 0x371   :  { %v2180_v54 = vmax.f32 %v2676_v51, 0.0  ;;  %v2100_v57 = vpop.f32.mrb[77].mxu1 }
 0x372   :  { %v2179_v60 = vmax.f32 %v2100_v57, 0.0 }
 0x373   :  { %2213 = vst.msk [vmem:[%s3488_s3 + $0xe8] sm:$0xff] %vm2183_vm1, %v2180_v54 }
 0x374   :  { %2212 = vst.msk [vmem:[%s3488_s3 + $0xe0] sm:$0xff] %vm2183_vm1, %v2179_v60  ;;  %v2679_v63 = vpop.f32.mrb[78].mxu1 }
 0x375   :  { %v2182_v2 = vmax.f32 %v2679_v63, 0.0  ;;  %v2110_v5 = vpop.f32.mrb[79].mxu1 }
 0x376   :  { %v2181_v8 = vmax.f32 %v2110_v5, 0.0 }
 0x377   :  { %2215 = vst.msk [vmem:[%s3488_s3 + $0xf8] sm:$0xff] %vm2183_vm1, %v2182_v2 }
 0x378   :  { %2214 = vst.msk [vmem:[%s3488_s3 + $0xf0] sm:$0xff] %vm2183_vm1, %v2181_v8 }
 0x379   :  { %2220 = vsyncpa [#allocation3], 1 }

</bundles_post_ra>
